<compile_context>
chip_gen: v6e
topology: v6e:2x2x1
jax: 0.10.0
libtpu: 0.0.40
codegen_flags: <defaults>
</compile_context>

<pallas_src>
import functools

import jax
import jax.numpy as jnp
from jax import lax
from jax.experimental import pallas as pl
from jax.experimental.pallas import tpu as pltpu

EPS = 1e-6
NEG_INF = -1e18


def _layernorm(x, g, b):
    mu = jnp.mean(x, axis=-1, keepdims=True)
    var = jnp.mean((x - mu) ** 2, axis=-1, keepdims=True)
    return (x - mu) * lax.rsqrt(var + EPS) * g + b


# ---------------------------------------------------------------------------
# Fused encoder kernel: all layers + final LayerNorm, gridded over batch.
# ---------------------------------------------------------------------------
def encoder_kernel(x_ref, pad_ref,
                   ln1_g_ref, ln1_b_ref, wqkv_ref, bqkv_ref, wo_ref, bo_ref,
                   ln2_g_ref, ln2_b_ref, w1_ref, b1_ref, w2_ref, b2_ref,
                   fin_g_ref, fin_b_ref,
                   o_ref,
                   qkv_sc, ctx_sc,
                   *, heads, num_layers):
    x = x_ref[0]                                    # [S, D] f32
    bias = pad_ref[0] * NEG_INF                     # [1, S] additive key mask
    S, D = x.shape
    dh = D // heads
    scale = 1.0 / (dh ** 0.5)

    for l in range(num_layers):                     # static unroll over layers
        # ---------------- pre-LN multi-head self-attention ----------------
        xn = _layernorm(x, ln1_g_ref[l], ln1_b_ref[l])
        # fused QKV projection: one [S,D] @ [D,3D] matmul (bf16 in, f32 acc)
        qkv = jnp.dot(xn.astype(jnp.bfloat16), wqkv_ref[l],
                      preferred_element_type=jnp.float32) + bqkv_ref[l]   # [S,3D]

        # stage heads-major q/k/v in VMEM scratch: qkv_sc is [3, H, S, dh]
        for h in range(heads):
            sl = slice(h * dh, (h + 1) * dh)
            qkv_sc[0, h] = qkv[:, sl] * scale
            qkv_sc[1, h] = qkv[:, D + h * dh:D + (h + 1) * dh]
            qkv_sc[2, h] = qkv[:, 2 * D + h * dh:2 * D + (h + 1) * dh]
        qh = qkv_sc[0]                              # [H, S, dh]
        kh = qkv_sc[1]
        vh = qkv_sc[2]

        # batched scores + single softmax over all heads
        s = jnp.einsum('hqd,hkd->hqk', qh, kh,
                       preferred_element_type=jnp.float32)                # [H,S,S]
        s = s + bias                                # mask padded keys
        s = s - jnp.max(s, axis=-1, keepdims=True)
        p = jnp.exp(s)
        p = p * pl.reciprocal(jnp.sum(p, axis=-1, keepdims=True), approx=True)

        ctx = jnp.einsum('hqk,hkd->hqd', p, vh,
                         preferred_element_type=jnp.float32)              # [H,S,dh]
        for h in range(heads):                      # re-pack heads -> [S, D]
            ctx_sc[:, h * dh:(h + 1) * dh] = ctx[h]

        # single output projection + residual (dropout = identity, eval mode)
        attn = jnp.dot(ctx_sc[...].astype(jnp.bfloat16), wo_ref[l],
                       preferred_element_type=jnp.float32) + bo_ref[l]
        x = x + attn

        # ---------------- PositionwiseFeedForward (pre-LN) ----------------
        xn2 = _layernorm(x, ln2_g_ref[l], ln2_b_ref[l])
        h1 = jnp.dot(xn2.astype(jnp.bfloat16), w1_ref[l],
                     preferred_element_type=jnp.float32) + b1_ref[l]
        h1 = jnp.maximum(h1, 0.0)
        x = x + jnp.dot(h1.astype(jnp.bfloat16), w2_ref[l],
                        preferred_element_type=jnp.float32) + b2_ref[l]

    # final encoder LayerNorm
    o_ref[0] = _layernorm(x, fin_g_ref[...], fin_b_ref[...])


# ---------------------------------------------------------------------------
# Parameters (stacked over layers) & full forward
# ---------------------------------------------------------------------------
def init_params(key, vocab, d_model, d_ff, num_layers):
    D, F, L = d_model, d_ff, num_layers
    keys = jax.random.split(key, 5)
    emb = jax.random.normal(keys[0], (vocab, D), jnp.float32) * 0.1
    emb = emb.at[0].set(0.0)   # padding_idx = 0 row zeroed (nn.Embedding semantics)

    def w(k, shape):
        return (jax.random.normal(k, shape, jnp.float32) * 0.05).astype(jnp.bfloat16)

    return {
        'embedding': emb,
        'ln1_g': jnp.ones((L, 1, D), jnp.float32),
        'ln1_b': jnp.zeros((L, 1, D), jnp.float32),
        'wqkv': w(keys[1], (L, D, 3 * D)),
        'bqkv': jnp.zeros((L, 1, 3 * D), jnp.float32),
        'wo': w(keys[2], (L, D, D)),
        'bo': jnp.zeros((L, 1, D), jnp.float32),
        'ln2_g': jnp.ones((L, 1, D), jnp.float32),
        'ln2_b': jnp.zeros((L, 1, D), jnp.float32),
        'w1': w(keys[3], (L, D, F)),
        'b1': jnp.zeros((L, 1, F), jnp.float32),
        'w2': w(keys[4], (L, F, D)),
        'b2': jnp.zeros((L, 1, D), jnp.float32),
        'fin_g': jnp.ones((1, D), jnp.float32),
        'fin_b': jnp.zeros((1, D), jnp.float32),
    }


def transformer_encoder_forward(src, params, *, heads, num_layers, padding_idx=0):
    S, B = src.shape
    D = params['embedding'].shape[1]
    F = params['w1'].shape[-1]
    L = num_layers
    dh = D // heads

    words = src.T                                            # [B, S] (tiny int transpose)
    x = jnp.take(params['embedding'], words, axis=0)         # [B, S, D] batch-major gather
    pad = (words == padding_idx).astype(jnp.float32)[:, None, :]   # [B, 1, S]
    # TODO(synk): bond/edge_feature path and graph_embed context-attention path
    # are not exercised (bond=None, graph_embed=None branch of the reference).

    x_spec = pl.BlockSpec((1, S, D), lambda b: (b, 0, 0))
    pad_spec = pl.BlockSpec((1, 1, S), lambda b: (b, 0, 0))
    full3 = lambda shape: pl.BlockSpec(shape, lambda b: (0, 0, 0))
    full2 = lambda shape: pl.BlockSpec(shape, lambda b: (0, 0))

    kernel = functools.partial(encoder_kernel, heads=heads, num_layers=num_layers)
    out = pl.pallas_call(
        kernel,
        out_shape=jax.ShapeDtypeStruct((B, S, D), jnp.float32),
        grid=(B,),
        in_specs=[x_spec, pad_spec,
                  full3((L, 1, D)), full3((L, 1, D)),
                  full3((L, D, 3 * D)), full3((L, 1, 3 * D)),
                  full3((L, D, D)), full3((L, 1, D)),
                  full3((L, 1, D)), full3((L, 1, D)),
                  full3((L, D, F)), full3((L, 1, F)),
                  full3((L, F, D)), full3((L, 1, D)),
                  full2((1, D)), full2((1, D))],
        out_specs=x_spec,
        scratch_shapes=[pltpu.VMEM((3, heads, S, dh), jnp.float32),
                        pltpu.VMEM((S, D), jnp.float32)],
        compiler_params=pltpu.CompilerParams(dimension_semantics=("parallel",)),
    )(x, pad,
      params['ln1_g'], params['ln1_b'], params['wqkv'], params['bqkv'],
      params['wo'], params['bo'], params['ln2_g'], params['ln2_b'],
      params['w1'], params['b1'], params['w2'], params['b2'],
      params['fin_g'], params['fin_b'])

    out = jnp.transpose(out, (1, 0, 2))                      # back to [S, B, D]
    edge_out = None                                          # bond=None branch
    return out, edge_out


if __name__ == "__main__":
    S, B = 8, 2
    d_model, heads, d_ff, num_layers = 32, 4, 64, 2
    vocab, padding_idx = 20, 0

    key = jax.random.PRNGKey(0)
    k_tok, k_par = jax.random.split(key)
    src = jax.random.randint(k_tok, (S, B), 1, vocab, dtype=jnp.int32)
    src = src.at[-1, 0].set(padding_idx)   # one padded position -> exercises mask

    params = init_params(k_par, vocab, d_model, d_ff, num_layers)
    out, edge_out = transformer_encoder_forward(
        src, params, heads=heads, num_layers=num_layers, padding_idx=padding_idx)
    out = jax.block_until_ready(out)

    assert out.shape == (S, B, d_model)
    assert bool(jnp.all(jnp.isfinite(out)))
    print("KERNEL_OK")
</pallas_src>

<mosaic_0001>
module attributes {stable_mosaic.version = 11 : i64} {
  func.func @encoder_kernel(%arg0: i32, %arg1: memref<1x8x32xf32, #tpu.memory_space<vmem>>, %arg2: memref<1x1x8xf32, #tpu.memory_space<vmem>>, %arg3: memref<2x1x32xf32, #tpu.memory_space<vmem>>, %arg4: memref<2x1x32xf32, #tpu.memory_space<vmem>>, %arg5: memref<2x32x96xbf16, #tpu.memory_space<vmem>>, %arg6: memref<2x1x96xf32, #tpu.memory_space<vmem>>, %arg7: memref<2x32x32xbf16, #tpu.memory_space<vmem>>, %arg8: memref<2x1x32xf32, #tpu.memory_space<vmem>>, %arg9: memref<2x1x32xf32, #tpu.memory_space<vmem>>, %arg10: memref<2x1x32xf32, #tpu.memory_space<vmem>>, %arg11: memref<2x32x64xbf16, #tpu.memory_space<vmem>>, %arg12: memref<2x1x64xf32, #tpu.memory_space<vmem>>, %arg13: memref<2x64x32xbf16, #tpu.memory_space<vmem>>, %arg14: memref<2x1x32xf32, #tpu.memory_space<vmem>>, %arg15: memref<1x32xf32, #tpu.memory_space<vmem>>, %arg16: memref<1x32xf32, #tpu.memory_space<vmem>>, %arg17: memref<1x8x32xf32, #tpu.memory_space<vmem>>, %arg18: memref<3x4x8x8xf32, #tpu.memory_space<vmem>>, %arg19: memref<8x32xf32, #tpu.memory_space<vmem>>) attributes {dimension_semantics = [#tpu.dimension_semantics<parallel>], iteration_bounds = array<i64: 2>, scalar_prefetch = 0 : i64, scratch_operands = 2 : i64, tpu.core_type = #tpu.core_type<tc>, window_params = [{transform_indices = @transform_0, window_bounds = array<i64: 1, 8, 32>}, {transform_indices = @transform_1, window_bounds = array<i64: 1, 1, 8>}, {pipeline_mode = #tpu.pipeline_mode<synchronous>, transform_indices = @transform_2, window_bounds = array<i64: 2, 1, 32>}, {pipeline_mode = #tpu.pipeline_mode<synchronous>, transform_indices = @transform_3, window_bounds = array<i64: 2, 1, 32>}, {pipeline_mode = #tpu.pipeline_mode<synchronous>, transform_indices = @transform_4, window_bounds = array<i64: 2, 32, 96>}, {pipeline_mode = #tpu.pipeline_mode<synchronous>, transform_indices = @transform_5, window_bounds = array<i64: 2, 1, 96>}, {pipeline_mode = #tpu.pipeline_mode<synchronous>, transform_indices = @transform_6, window_bounds = array<i64: 2, 32, 32>}, {pipeline_mode = #tpu.pipeline_mode<synchronous>, transform_indices = @transform_7, window_bounds = array<i64: 2, 1, 32>}, {pipeline_mode = #tpu.pipeline_mode<synchronous>, transform_indices = @transform_8, window_bounds = array<i64: 2, 1, 32>}, {pipeline_mode = #tpu.pipeline_mode<synchronous>, transform_indices = @transform_9, window_bounds = array<i64: 2, 1, 32>}, {pipeline_mode = #tpu.pipeline_mode<synchronous>, transform_indices = @transform_10, window_bounds = array<i64: 2, 32, 64>}, {pipeline_mode = #tpu.pipeline_mode<synchronous>, transform_indices = @transform_11, window_bounds = array<i64: 2, 1, 64>}, {pipeline_mode = #tpu.pipeline_mode<synchronous>, transform_indices = @transform_12, window_bounds = array<i64: 2, 64, 32>}, {pipeline_mode = #tpu.pipeline_mode<synchronous>, transform_indices = @transform_13, window_bounds = array<i64: 2, 1, 32>}, {pipeline_mode = #tpu.pipeline_mode<synchronous>, transform_indices = @transform_14, window_bounds = array<i64: 1, 32>}, {pipeline_mode = #tpu.pipeline_mode<synchronous>, transform_indices = @transform_15, window_bounds = array<i64: 1, 32>}, {transform_indices = @transform_16, window_bounds = array<i64: 1, 8, 32>}]} {
    %c0 = arith.constant 0 : index
    %c0_0 = arith.constant 0 : index
    %c0_1 = arith.constant 0 : index
    %0 = vector.load %arg1[%c0, %c0_0, %c0_1] : memref<1x8x32xf32, #tpu.memory_space<vmem>>, vector<1x8x32xf32>
    %1 = vector.shape_cast %0 : vector<1x8x32xf32> to vector<8x32xf32>
    %c0_2 = arith.constant 0 : index
    %c0_3 = arith.constant 0 : index
    %c0_4 = arith.constant 0 : index
    %2 = vector.load %arg2[%c0_2, %c0_3, %c0_4] : memref<1x1x8xf32, #tpu.memory_space<vmem>>, vector<1x1x8xf32>
    %3 = vector.shape_cast %2 : vector<1x1x8xf32> to vector<1x8xf32>
    %cst = arith.constant -9.99999984E+17 : f32
    %4 = vector.broadcast %cst : f32 to vector<1x8xf32>
    %5 = arith.mulf %3, %4 : vector<1x8xf32>
    %c0_5 = arith.constant 0 : index
    %c0_6 = arith.constant 0 : index
    %c0_7 = arith.constant 0 : index
    %6 = vector.load %arg3[%c0_5, %c0_6, %c0_7] : memref<2x1x32xf32, #tpu.memory_space<vmem>>, vector<1x1x32xf32>
    %7 = vector.shape_cast %6 : vector<1x1x32xf32> to vector<1x32xf32>
    %c0_8 = arith.constant 0 : index
    %c0_9 = arith.constant 0 : index
    %c0_10 = arith.constant 0 : index
    %8 = vector.load %arg4[%c0_8, %c0_9, %c0_10] : memref<2x1x32xf32, #tpu.memory_space<vmem>>, vector<1x1x32xf32>
    %9 = vector.shape_cast %8 : vector<1x1x32xf32> to vector<1x32xf32>
    %cst_11 = arith.constant dense<0.000000e+00> : vector<8xf32>
    %10 = vector.multi_reduction <add>, %1, %cst_11 [1] : vector<8x32xf32> to vector<8xf32>
    %11 = vector.shape_cast %10 : vector<8xf32> to vector<8x1xf32>
    %cst_12 = arith.constant 3.200000e+01 : f32
    %12 = vector.broadcast %cst_12 : f32 to vector<8x1xf32>
    %13 = arith.divf %11, %12 : vector<8x1xf32>
    %14 = vector.broadcast %13 : vector<8x1xf32> to vector<8x32xf32>
    %15 = arith.subf %1, %14 : vector<8x32xf32>
    %16 = arith.mulf %15, %15 : vector<8x32xf32>
    %cst_13 = arith.constant dense<0.000000e+00> : vector<8xf32>
    %17 = vector.multi_reduction <add>, %16, %cst_13 [1] : vector<8x32xf32> to vector<8xf32>
    %18 = vector.shape_cast %17 : vector<8xf32> to vector<8x1xf32>
    %cst_14 = arith.constant 3.200000e+01 : f32
    %19 = vector.broadcast %cst_14 : f32 to vector<8x1xf32>
    %20 = arith.divf %18, %19 : vector<8x1xf32>
    %21 = vector.broadcast %13 : vector<8x1xf32> to vector<8x32xf32>
    %22 = arith.subf %1, %21 : vector<8x32xf32>
    %cst_15 = arith.constant 9.99999997E-7 : f32
    %23 = vector.broadcast %cst_15 : f32 to vector<8x1xf32>
    %24 = arith.addf %20, %23 : vector<8x1xf32>
    %25 = math.rsqrt %24 : vector<8x1xf32>
    %26 = vector.broadcast %25 : vector<8x1xf32> to vector<8x32xf32>
    %27 = arith.mulf %22, %26 : vector<8x32xf32>
    %28 = vector.broadcast %7 : vector<1x32xf32> to vector<8x32xf32>
    %29 = arith.mulf %27, %28 : vector<8x32xf32>
    %30 = vector.broadcast %9 : vector<1x32xf32> to vector<8x32xf32>
    %31 = arith.addf %29, %30 : vector<8x32xf32>
    %32 = arith.truncf %31 : vector<8x32xf32> to vector<8x32xbf16>
    %c0_16 = arith.constant 0 : index
    %c0_17 = arith.constant 0 : index
    %c0_18 = arith.constant 0 : index
    %33 = vector.load %arg5[%c0_16, %c0_17, %c0_18] : memref<2x32x96xbf16, #tpu.memory_space<vmem>>, vector<1x32x96xbf16>
    %34 = vector.shape_cast %33 : vector<1x32x96xbf16> to vector<32x96xbf16>
    %cst_19 = arith.constant dense<0.000000e+00> : vector<8x96xf32>
    %35 = tpu.matmul %32, %34, %cst_19 {dimension_numbers = #tpu.dot_dimension_numbers<[1], [0], [0], [1], [0, 0, 1, 1], [], []>} : vector<8x32xbf16>, vector<32x96xbf16>, vector<8x96xf32> -> vector<8x96xf32>
    %c0_20 = arith.constant 0 : index
    %c0_21 = arith.constant 0 : index
    %c0_22 = arith.constant 0 : index
    %36 = vector.load %arg6[%c0_20, %c0_21, %c0_22] : memref<2x1x96xf32, #tpu.memory_space<vmem>>, vector<1x1x96xf32>
    %37 = vector.shape_cast %36 : vector<1x1x96xf32> to vector<1x96xf32>
    %38 = vector.broadcast %37 : vector<1x96xf32> to vector<8x96xf32>
    %39 = arith.addf %35, %38 : vector<8x96xf32>
    %40 = vector.extract_strided_slice %39 {offsets = [0, 0], sizes = [8, 8], strides = [1, 1]} : vector<8x96xf32> to vector<8x8xf32>
    %cst_23 = arith.constant 0.353553385 : f32
    %41 = vector.broadcast %cst_23 : f32 to vector<8x8xf32>
    %42 = arith.mulf %40, %41 : vector<8x8xf32>
    %c0_24 = arith.constant 0 : index
    %c0_25 = arith.constant 0 : index
    %c0_26 = arith.constant 0 : index
    %c0_27 = arith.constant 0 : index
    %43 = vector.load %arg18[%c0_24, %c0_25, %c0_26, %c0_27] : memref<3x4x8x8xf32, #tpu.memory_space<vmem>>, vector<1x1x8x8xf32>
    %44 = vector.shape_cast %43 : vector<1x1x8x8xf32> to vector<8x8xf32>
    %45 = vector.shape_cast %42 : vector<8x8xf32> to vector<1x1x8x8xf32>
    tpu.vector_store %arg18[%c0_24, %c0_25, %c0_26, %c0_27], %45 {strides = array<i32>} : memref<3x4x8x8xf32, #tpu.memory_space<vmem>>, vector<1x1x8x8xf32>,
    %46 = vector.extract_strided_slice %39 {offsets = [0, 32], sizes = [8, 8], strides = [1, 1]} : vector<8x96xf32> to vector<8x8xf32>
    %c1 = arith.constant 1 : index
    %c0_28 = arith.constant 0 : index
    %c0_29 = arith.constant 0 : index
    %c0_30 = arith.constant 0 : index
    %47 = vector.load %arg18[%c1, %c0_28, %c0_29, %c0_30] : memref<3x4x8x8xf32, #tpu.memory_space<vmem>>, vector<1x1x8x8xf32>
    %48 = vector.shape_cast %47 : vector<1x1x8x8xf32> to vector<8x8xf32>
    %49 = vector.shape_cast %46 : vector<8x8xf32> to vector<1x1x8x8xf32>
    tpu.vector_store %arg18[%c1, %c0_28, %c0_29, %c0_30], %49 {strides = array<i32>} : memref<3x4x8x8xf32, #tpu.memory_space<vmem>>, vector<1x1x8x8xf32>,
    %50 = vector.extract_strided_slice %39 {offsets = [0, 64], sizes = [8, 8], strides = [1, 1]} : vector<8x96xf32> to vector<8x8xf32>
    %c2 = arith.constant 2 : index
    %c0_31 = arith.constant 0 : index
    %c0_32 = arith.constant 0 : index
    %c0_33 = arith.constant 0 : index
    %51 = vector.load %arg18[%c2, %c0_31, %c0_32, %c0_33] : memref<3x4x8x8xf32, #tpu.memory_space<vmem>>, vector<1x1x8x8xf32>
    %52 = vector.shape_cast %51 : vector<1x1x8x8xf32> to vector<8x8xf32>
    %53 = vector.shape_cast %50 : vector<8x8xf32> to vector<1x1x8x8xf32>
    tpu.vector_store %arg18[%c2, %c0_31, %c0_32, %c0_33], %53 {strides = array<i32>} : memref<3x4x8x8xf32, #tpu.memory_space<vmem>>, vector<1x1x8x8xf32>,
    %54 = vector.extract_strided_slice %39 {offsets = [0, 8], sizes = [8, 8], strides = [1, 1]} : vector<8x96xf32> to vector<8x8xf32>
    %cst_34 = arith.constant 0.353553385 : f32
    %55 = vector.broadcast %cst_34 : f32 to vector<8x8xf32>
    %56 = arith.mulf %54, %55 : vector<8x8xf32>
    %c0_35 = arith.constant 0 : index
    %c1_36 = arith.constant 1 : index
    %c0_37 = arith.constant 0 : index
    %c0_38 = arith.constant 0 : index
    %57 = vector.load %arg18[%c0_35, %c1_36, %c0_37, %c0_38] : memref<3x4x8x8xf32, #tpu.memory_space<vmem>>, vector<1x1x8x8xf32>
    %58 = vector.shape_cast %57 : vector<1x1x8x8xf32> to vector<8x8xf32>
    %59 = vector.shape_cast %56 : vector<8x8xf32> to vector<1x1x8x8xf32>
    tpu.vector_store %arg18[%c0_35, %c1_36, %c0_37, %c0_38], %59 {strides = array<i32>} : memref<3x4x8x8xf32, #tpu.memory_space<vmem>>, vector<1x1x8x8xf32>,
    %60 = vector.extract_strided_slice %39 {offsets = [0, 40], sizes = [8, 8], strides = [1, 1]} : vector<8x96xf32> to vector<8x8xf32>
    %c1_39 = arith.constant 1 : index
    %c1_40 = arith.constant 1 : index
    %c0_41 = arith.constant 0 : index
    %c0_42 = arith.constant 0 : index
    %61 = vector.load %arg18[%c1_39, %c1_40, %c0_41, %c0_42] : memref<3x4x8x8xf32, #tpu.memory_space<vmem>>, vector<1x1x8x8xf32>
    %62 = vector.shape_cast %61 : vector<1x1x8x8xf32> to vector<8x8xf32>
    %63 = vector.shape_cast %60 : vector<8x8xf32> to vector<1x1x8x8xf32>
    tpu.vector_store %arg18[%c1_39, %c1_40, %c0_41, %c0_42], %63 {strides = array<i32>} : memref<3x4x8x8xf32, #tpu.memory_space<vmem>>, vector<1x1x8x8xf32>,
    %64 = vector.extract_strided_slice %39 {offsets = [0, 72], sizes = [8, 8], strides = [1, 1]} : vector<8x96xf32> to vector<8x8xf32>
    %c2_43 = arith.constant 2 : index
    %c1_44 = arith.constant 1 : index
    %c0_45 = arith.constant 0 : index
    %c0_46 = arith.constant 0 : index
    %65 = vector.load %arg18[%c2_43, %c1_44, %c0_45, %c0_46] : memref<3x4x8x8xf32, #tpu.memory_space<vmem>>, vector<1x1x8x8xf32>
    %66 = vector.shape_cast %65 : vector<1x1x8x8xf32> to vector<8x8xf32>
    %67 = vector.shape_cast %64 : vector<8x8xf32> to vector<1x1x8x8xf32>
    tpu.vector_store %arg18[%c2_43, %c1_44, %c0_45, %c0_46], %67 {strides = array<i32>} : memref<3x4x8x8xf32, #tpu.memory_space<vmem>>, vector<1x1x8x8xf32>,
    %68 = vector.extract_strided_slice %39 {offsets = [0, 16], sizes = [8, 8], strides = [1, 1]} : vector<8x96xf32> to vector<8x8xf32>
    %cst_47 = arith.constant 0.353553385 : f32
    %69 = vector.broadcast %cst_47 : f32 to vector<8x8xf32>
    %70 = arith.mulf %68, %69 : vector<8x8xf32>
    %c0_48 = arith.constant 0 : index
    %c2_49 = arith.constant 2 : index
    %c0_50 = arith.constant 0 : index
    %c0_51 = arith.constant 0 : index
    %71 = vector.load %arg18[%c0_48, %c2_49, %c0_50, %c0_51] : memref<3x4x8x8xf32, #tpu.memory_space<vmem>>, vector<1x1x8x8xf32>
    %72 = vector.shape_cast %71 : vector<1x1x8x8xf32> to vector<8x8xf32>
    %73 = vector.shape_cast %70 : vector<8x8xf32> to vector<1x1x8x8xf32>
    tpu.vector_store %arg18[%c0_48, %c2_49, %c0_50, %c0_51], %73 {strides = array<i32>} : memref<3x4x8x8xf32, #tpu.memory_space<vmem>>, vector<1x1x8x8xf32>,
    %74 = vector.extract_strided_slice %39 {offsets = [0, 48], sizes = [8, 8], strides = [1, 1]} : vector<8x96xf32> to vector<8x8xf32>
    %c1_52 = arith.constant 1 : index
    %c2_53 = arith.constant 2 : index
    %c0_54 = arith.constant 0 : index
    %c0_55 = arith.constant 0 : index
    %75 = vector.load %arg18[%c1_52, %c2_53, %c0_54, %c0_55] : memref<3x4x8x8xf32, #tpu.memory_space<vmem>>, vector<1x1x8x8xf32>
    %76 = vector.shape_cast %75 : vector<1x1x8x8xf32> to vector<8x8xf32>
    %77 = vector.shape_cast %74 : vector<8x8xf32> to vector<1x1x8x8xf32>
    tpu.vector_store %arg18[%c1_52, %c2_53, %c0_54, %c0_55], %77 {strides = array<i32>} : memref<3x4x8x8xf32, #tpu.memory_space<vmem>>, vector<1x1x8x8xf32>,
    %78 = vector.extract_strided_slice %39 {offsets = [0, 80], sizes = [8, 8], strides = [1, 1]} : vector<8x96xf32> to vector<8x8xf32>
    %c2_56 = arith.constant 2 : index
    %c2_57 = arith.constant 2 : index
    %c0_58 = arith.constant 0 : index
    %c0_59 = arith.constant 0 : index
    %79 = vector.load %arg18[%c2_56, %c2_57, %c0_58, %c0_59] : memref<3x4x8x8xf32, #tpu.memory_space<vmem>>, vector<1x1x8x8xf32>
    %80 = vector.shape_cast %79 : vector<1x1x8x8xf32> to vector<8x8xf32>
    %81 = vector.shape_cast %78 : vector<8x8xf32> to vector<1x1x8x8xf32>
    tpu.vector_store %arg18[%c2_56, %c2_57, %c0_58, %c0_59], %81 {strides = array<i32>} : memref<3x4x8x8xf32, #tpu.memory_space<vmem>>, vector<1x1x8x8xf32>,
    %82 = vector.extract_strided_slice %39 {offsets = [0, 24], sizes = [8, 8], strides = [1, 1]} : vector<8x96xf32> to vector<8x8xf32>
    %cst_60 = arith.constant 0.353553385 : f32
    %83 = vector.broadcast %cst_60 : f32 to vector<8x8xf32>
    %84 = arith.mulf %82, %83 : vector<8x8xf32>
    %c0_61 = arith.constant 0 : index
    %c3 = arith.constant 3 : index
    %c0_62 = arith.constant 0 : index
    %c0_63 = arith.constant 0 : index
    %85 = vector.load %arg18[%c0_61, %c3, %c0_62, %c0_63] : memref<3x4x8x8xf32, #tpu.memory_space<vmem>>, vector<1x1x8x8xf32>
    %86 = vector.shape_cast %85 : vector<1x1x8x8xf32> to vector<8x8xf32>
    %87 = vector.shape_cast %84 : vector<8x8xf32> to vector<1x1x8x8xf32>
    tpu.vector_store %arg18[%c0_61, %c3, %c0_62, %c0_63], %87 {strides = array<i32>} : memref<3x4x8x8xf32, #tpu.memory_space<vmem>>, vector<1x1x8x8xf32>,
    %88 = vector.extract_strided_slice %39 {offsets = [0, 56], sizes = [8, 8], strides = [1, 1]} : vector<8x96xf32> to vector<8x8xf32>
    %c1_64 = arith.constant 1 : index
    %c3_65 = arith.constant 3 : index
    %c0_66 = arith.constant 0 : index
    %c0_67 = arith.constant 0 : index
    %89 = vector.load %arg18[%c1_64, %c3_65, %c0_66, %c0_67] : memref<3x4x8x8xf32, #tpu.memory_space<vmem>>, vector<1x1x8x8xf32>
    %90 = vector.shape_cast %89 : vector<1x1x8x8xf32> to vector<8x8xf32>
    %91 = vector.shape_cast %88 : vector<8x8xf32> to vector<1x1x8x8xf32>
    tpu.vector_store %arg18[%c1_64, %c3_65, %c0_66, %c0_67], %91 {strides = array<i32>} : memref<3x4x8x8xf32, #tpu.memory_space<vmem>>, vector<1x1x8x8xf32>,
    %92 = vector.extract_strided_slice %39 {offsets = [0, 88], sizes = [8, 8], strides = [1, 1]} : vector<8x96xf32> to vector<8x8xf32>
    %c2_68 = arith.constant 2 : index
    %c3_69 = arith.constant 3 : index
    %c0_70 = arith.constant 0 : index
    %c0_71 = arith.constant 0 : index
    %93 = vector.load %arg18[%c2_68, %c3_69, %c0_70, %c0_71] : memref<3x4x8x8xf32, #tpu.memory_space<vmem>>, vector<1x1x8x8xf32>
    %94 = vector.shape_cast %93 : vector<1x1x8x8xf32> to vector<8x8xf32>
    %95 = vector.shape_cast %92 : vector<8x8xf32> to vector<1x1x8x8xf32>
    tpu.vector_store %arg18[%c2_68, %c3_69, %c0_70, %c0_71], %95 {strides = array<i32>} : memref<3x4x8x8xf32, #tpu.memory_space<vmem>>, vector<1x1x8x8xf32>,
    %c0_72 = arith.constant 0 : index
    %c0_73 = arith.constant 0 : index
    %c0_74 = arith.constant 0 : index
    %c0_75 = arith.constant 0 : index
    %96 = vector.load %arg18[%c0_72, %c0_73, %c0_74, %c0_75] : memref<3x4x8x8xf32, #tpu.memory_space<vmem>>, vector<1x4x8x8xf32>
    %97 = vector.shape_cast %96 : vector<1x4x8x8xf32> to vector<4x8x8xf32>
    %c1_76 = arith.constant 1 : index
    %c0_77 = arith.constant 0 : index
    %c0_78 = arith.constant 0 : index
    %c0_79 = arith.constant 0 : index
    %98 = vector.load %arg18[%c1_76, %c0_77, %c0_78, %c0_79] : memref<3x4x8x8xf32, #tpu.memory_space<vmem>>, vector<1x4x8x8xf32>
    %99 = vector.shape_cast %98 : vector<1x4x8x8xf32> to vector<4x8x8xf32>
    %c2_80 = arith.constant 2 : index
    %c0_81 = arith.constant 0 : index
    %c0_82 = arith.constant 0 : index
    %c0_83 = arith.constant 0 : index
    %100 = vector.load %arg18[%c2_80, %c0_81, %c0_82, %c0_83] : memref<3x4x8x8xf32, #tpu.memory_space<vmem>>, vector<1x4x8x8xf32>
    %101 = vector.shape_cast %100 : vector<1x4x8x8xf32> to vector<4x8x8xf32>
    "tpu.trace_start"() <{level = 10 : i32, message = "hqd,hkd->hqk"}> : () -> ()
    %cst_84 = arith.constant dense<0.000000e+00> : vector<4x8x8xf32>
    %102 = tpu.matmul %97, %99, %cst_84 {dimension_numbers = #tpu.dot_dimension_numbers<[2], [2], [1], [1], [0, 0, 0, 1, 1, 1], [0], [0]>} : vector<4x8x8xf32>, vector<4x8x8xf32>, vector<4x8x8xf32> -> vector<4x8x8xf32>
    "tpu.trace_stop"() : () -> ()
    %103 = vector.shape_cast %5 : vector<1x8xf32> to vector<1x1x8xf32>
    %104 = vector.broadcast %103 : vector<1x1x8xf32> to vector<4x8x8xf32>
    %105 = arith.addf %102, %104 : vector<4x8x8xf32>
    %cst_85 = arith.constant dense<0xFF800000> : vector<4x8xf32>
    %106 = vector.multi_reduction <maximumf>, %105, %cst_85 [2] : vector<4x8x8xf32> to vector<4x8xf32>
    %107 = vector.shape_cast %106 : vector<4x8xf32> to vector<4x8x1xf32>
    %108 = vector.broadcast %107 : vector<4x8x1xf32> to vector<4x8x8xf32>
    %109 = arith.subf %105, %108 : vector<4x8x8xf32>
    %110 = math.exp %109 : vector<4x8x8xf32>
    %cst_86 = arith.constant dense<0.000000e+00> : vector<4x8xf32>
    %111 = vector.multi_reduction <add>, %110, %cst_86 [2] : vector<4x8x8xf32> to vector<4x8xf32>
    %112 = vector.shape_cast %111 : vector<4x8xf32> to vector<4x8x1xf32>
    %113 = tpu.reciprocal %112 {approx = true} : vector<4x8x1xf32> -> vector<4x8x1xf32>
    %114 = vector.broadcast %113 : vector<4x8x1xf32> to vector<4x8x8xf32>
    %115 = arith.mulf %110, %114 : vector<4x8x8xf32>
    "tpu.trace_start"() <{level = 10 : i32, message = "hqk,hkd->hqd"}> : () -> ()
    %cst_87 = arith.constant dense<0.000000e+00> : vector<4x8x8xf32>
    %116 = tpu.matmul %115, %101, %cst_87 {dimension_numbers = #tpu.dot_dimension_numbers<[2], [1], [1], [2], [0, 0, 0, 1, 1, 2], [0], [0]>} : vector<4x8x8xf32>, vector<4x8x8xf32>, vector<4x8x8xf32> -> vector<4x8x8xf32>
    "tpu.trace_stop"() : () -> ()
    %117 = vector.extract_strided_slice %116 {offsets = [0, 0, 0], sizes = [1, 8, 8], strides = [1, 1, 1]} : vector<4x8x8xf32> to vector<1x8x8xf32>
    %118 = vector.shape_cast %117 : vector<1x8x8xf32> to vector<8x8xf32>
    %c0_88 = arith.constant 0 : index
    %c0_89 = arith.constant 0 : index
    %119 = vector.load %arg19[%c0_88, %c0_89] : memref<8x32xf32, #tpu.memory_space<vmem>>, vector<8x8xf32>
    tpu.vector_store %arg19[%c0_88, %c0_89], %118 {strides = array<i32>} : memref<8x32xf32, #tpu.memory_space<vmem>>, vector<8x8xf32>,
    %120 = vector.extract_strided_slice %116 {offsets = [1, 0, 0], sizes = [1, 8, 8], strides = [1, 1, 1]} : vector<4x8x8xf32> to vector<1x8x8xf32>
    %121 = vector.shape_cast %120 : vector<1x8x8xf32> to vector<8x8xf32>
    %c0_90 = arith.constant 0 : index
    %c8 = arith.constant 8 : index
    %122 = vector.load %arg19[%c0_90, %c8] : memref<8x32xf32, #tpu.memory_space<vmem>>, vector<8x8xf32>
    tpu.vector_store %arg19[%c0_90, %c8], %121 {strides = array<i32>} : memref<8x32xf32, #tpu.memory_space<vmem>>, vector<8x8xf32>,
    %123 = vector.extract_strided_slice %116 {offsets = [2, 0, 0], sizes = [1, 8, 8], strides = [1, 1, 1]} : vector<4x8x8xf32> to vector<1x8x8xf32>
    %124 = vector.shape_cast %123 : vector<1x8x8xf32> to vector<8x8xf32>
    %c0_91 = arith.constant 0 : index
    %c16 = arith.constant 16 : index
    %125 = vector.load %arg19[%c0_91, %c16] : memref<8x32xf32, #tpu.memory_space<vmem>>, vector<8x8xf32>
    tpu.vector_store %arg19[%c0_91, %c16], %124 {strides = array<i32>} : memref<8x32xf32, #tpu.memory_space<vmem>>, vector<8x8xf32>,
    %126 = vector.extract_strided_slice %116 {offsets = [3, 0, 0], sizes = [1, 8, 8], strides = [1, 1, 1]} : vector<4x8x8xf32> to vector<1x8x8xf32>
    %127 = vector.shape_cast %126 : vector<1x8x8xf32> to vector<8x8xf32>
    %c0_92 = arith.constant 0 : index
    %c24 = arith.constant 24 : index
    %128 = vector.load %arg19[%c0_92, %c24] : memref<8x32xf32, #tpu.memory_space<vmem>>, vector<8x8xf32>
    tpu.vector_store %arg19[%c0_92, %c24], %127 {strides = array<i32>} : memref<8x32xf32, #tpu.memory_space<vmem>>, vector<8x8xf32>,
    %c0_93 = arith.constant 0 : index
    %c0_94 = arith.constant 0 : index
    %129 = vector.load %arg19[%c0_93, %c0_94] : memref<8x32xf32, #tpu.memory_space<vmem>>, vector<8x32xf32>
    %130 = arith.truncf %129 : vector<8x32xf32> to vector<8x32xbf16>
    %c0_95 = arith.constant 0 : index
    %c0_96 = arith.constant 0 : index
    %c0_97 = arith.constant 0 : index
    %131 = vector.load %arg7[%c0_95, %c0_96, %c0_97] : memref<2x32x32xbf16, #tpu.memory_space<vmem>>, vector<1x32x32xbf16>
    %132 = vector.shape_cast %131 : vector<1x32x32xbf16> to vector<32x32xbf16>
    %cst_98 = arith.constant dense<0.000000e+00> : vector<8x32xf32>
    %133 = tpu.matmul %130, %132, %cst_98 {dimension_numbers = #tpu.dot_dimension_numbers<[1], [0], [0], [1], [0, 0, 1, 1], [], []>} : vector<8x32xbf16>, vector<32x32xbf16>, vector<8x32xf32> -> vector<8x32xf32>
    %c0_99 = arith.constant 0 : index
    %c0_100 = arith.constant 0 : index
    %c0_101 = arith.constant 0 : index
    %134 = vector.load %arg8[%c0_99, %c0_100, %c0_101] : memref<2x1x32xf32, #tpu.memory_space<vmem>>, vector<1x1x32xf32>
    %135 = vector.shape_cast %134 : vector<1x1x32xf32> to vector<1x32xf32>
    %136 = vector.broadcast %135 : vector<1x32xf32> to vector<8x32xf32>
    %137 = arith.addf %133, %136 : vector<8x32xf32>
    %138 = arith.addf %1, %137 : vector<8x32xf32>
    %c0_102 = arith.constant 0 : index
    %c0_103 = arith.constant 0 : index
    %c0_104 = arith.constant 0 : index
    %139 = vector.load %arg9[%c0_102, %c0_103, %c0_104] : memref<2x1x32xf32, #tpu.memory_space<vmem>>, vector<1x1x32xf32>
    %140 = vector.shape_cast %139 : vector<1x1x32xf32> to vector<1x32xf32>
    %c0_105 = arith.constant 0 : index
    %c0_106 = arith.constant 0 : index
    %c0_107 = arith.constant 0 : index
    %141 = vector.load %arg10[%c0_105, %c0_106, %c0_107] : memref<2x1x32xf32, #tpu.memory_space<vmem>>, vector<1x1x32xf32>
    %142 = vector.shape_cast %141 : vector<1x1x32xf32> to vector<1x32xf32>
    %cst_108 = arith.constant dense<0.000000e+00> : vector<8xf32>
    %143 = vector.multi_reduction <add>, %138, %cst_108 [1] : vector<8x32xf32> to vector<8xf32>
    %144 = vector.shape_cast %143 : vector<8xf32> to vector<8x1xf32>
    %cst_109 = arith.constant 3.200000e+01 : f32
    %145 = vector.broadcast %cst_109 : f32 to vector<8x1xf32>
    %146 = arith.divf %144, %145 : vector<8x1xf32>
    %147 = vector.broadcast %146 : vector<8x1xf32> to vector<8x32xf32>
    %148 = arith.subf %138, %147 : vector<8x32xf32>
    %149 = arith.mulf %148, %148 : vector<8x32xf32>
    %cst_110 = arith.constant dense<0.000000e+00> : vector<8xf32>
    %150 = vector.multi_reduction <add>, %149, %cst_110 [1] : vector<8x32xf32> to vector<8xf32>
    %151 = vector.shape_cast %150 : vector<8xf32> to vector<8x1xf32>
    %cst_111 = arith.constant 3.200000e+01 : f32
    %152 = vector.broadcast %cst_111 : f32 to vector<8x1xf32>
    %153 = arith.divf %151, %152 : vector<8x1xf32>
    %154 = vector.broadcast %146 : vector<8x1xf32> to vector<8x32xf32>
    %155 = arith.subf %138, %154 : vector<8x32xf32>
    %cst_112 = arith.constant 9.99999997E-7 : f32
    %156 = vector.broadcast %cst_112 : f32 to vector<8x1xf32>
    %157 = arith.addf %153, %156 : vector<8x1xf32>
    %158 = math.rsqrt %157 : vector<8x1xf32>
    %159 = vector.broadcast %158 : vector<8x1xf32> to vector<8x32xf32>
    %160 = arith.mulf %155, %159 : vector<8x32xf32>
    %161 = vector.broadcast %140 : vector<1x32xf32> to vector<8x32xf32>
    %162 = arith.mulf %160, %161 : vector<8x32xf32>
    %163 = vector.broadcast %142 : vector<1x32xf32> to vector<8x32xf32>
    %164 = arith.addf %162, %163 : vector<8x32xf32>
    %165 = arith.truncf %164 : vector<8x32xf32> to vector<8x32xbf16>
    %c0_113 = arith.constant 0 : index
    %c0_114 = arith.constant 0 : index
    %c0_115 = arith.constant 0 : index
    %166 = vector.load %arg11[%c0_113, %c0_114, %c0_115] : memref<2x32x64xbf16, #tpu.memory_space<vmem>>, vector<1x32x64xbf16>
    %167 = vector.shape_cast %166 : vector<1x32x64xbf16> to vector<32x64xbf16>
    %cst_116 = arith.constant dense<0.000000e+00> : vector<8x64xf32>
    %168 = tpu.matmul %165, %167, %cst_116 {dimension_numbers = #tpu.dot_dimension_numbers<[1], [0], [0], [1], [0, 0, 1, 1], [], []>} : vector<8x32xbf16>, vector<32x64xbf16>, vector<8x64xf32> -> vector<8x64xf32>
    %c0_117 = arith.constant 0 : index
    %c0_118 = arith.constant 0 : index
    %c0_119 = arith.constant 0 : index
    %169 = vector.load %arg12[%c0_117, %c0_118, %c0_119] : memref<2x1x64xf32, #tpu.memory_space<vmem>>, vector<1x1x64xf32>
    %170 = vector.shape_cast %169 : vector<1x1x64xf32> to vector<1x64xf32>
    %171 = vector.broadcast %170 : vector<1x64xf32> to vector<8x64xf32>
    %172 = arith.addf %168, %171 : vector<8x64xf32>
    %cst_120 = arith.constant 0.000000e+00 : f32
    %173 = vector.broadcast %cst_120 : f32 to vector<8x64xf32>
    %174 = arith.maximumf %172, %173 : vector<8x64xf32>
    %175 = arith.truncf %174 : vector<8x64xf32> to vector<8x64xbf16>
    %c0_121 = arith.constant 0 : index
    %c0_122 = arith.constant 0 : index
    %c0_123 = arith.constant 0 : index
    %176 = vector.load %arg13[%c0_121, %c0_122, %c0_123] : memref<2x64x32xbf16, #tpu.memory_space<vmem>>, vector<1x64x32xbf16>
    %177 = vector.shape_cast %176 : vector<1x64x32xbf16> to vector<64x32xbf16>
    %cst_124 = arith.constant dense<0.000000e+00> : vector<8x32xf32>
    %178 = tpu.matmul %175, %177, %cst_124 {dimension_numbers = #tpu.dot_dimension_numbers<[1], [0], [0], [1], [0, 0, 1, 1], [], []>} : vector<8x64xbf16>, vector<64x32xbf16>, vector<8x32xf32> -> vector<8x32xf32>
    %179 = arith.addf %138, %178 : vector<8x32xf32>
    %c0_125 = arith.constant 0 : index
    %c0_126 = arith.constant 0 : index
    %c0_127 = arith.constant 0 : index
    %180 = vector.load %arg14[%c0_125, %c0_126, %c0_127] : memref<2x1x32xf32, #tpu.memory_space<vmem>>, vector<1x1x32xf32>
    %181 = vector.shape_cast %180 : vector<1x1x32xf32> to vector<1x32xf32>
    %182 = vector.broadcast %181 : vector<1x32xf32> to vector<8x32xf32>
    %183 = arith.addf %179, %182 : vector<8x32xf32>
    %c1_128 = arith.constant 1 : index
    %c0_129 = arith.constant 0 : index
    %c0_130 = arith.constant 0 : index
    %184 = vector.load %arg3[%c1_128, %c0_129, %c0_130] : memref<2x1x32xf32, #tpu.memory_space<vmem>>, vector<1x1x32xf32>
    %185 = vector.shape_cast %184 : vector<1x1x32xf32> to vector<1x32xf32>
    %c1_131 = arith.constant 1 : index
    %c0_132 = arith.constant 0 : index
    %c0_133 = arith.constant 0 : index
    %186 = vector.load %arg4[%c1_131, %c0_132, %c0_133] : memref<2x1x32xf32, #tpu.memory_space<vmem>>, vector<1x1x32xf32>
    %187 = vector.shape_cast %186 : vector<1x1x32xf32> to vector<1x32xf32>
    %cst_134 = arith.constant dense<0.000000e+00> : vector<8xf32>
    %188 = vector.multi_reduction <add>, %183, %cst_134 [1] : vector<8x32xf32> to vector<8xf32>
    %189 = vector.shape_cast %188 : vector<8xf32> to vector<8x1xf32>
    %cst_135 = arith.constant 3.200000e+01 : f32
    %190 = vector.broadcast %cst_135 : f32 to vector<8x1xf32>
    %191 = arith.divf %189, %190 : vector<8x1xf32>
    %192 = vector.broadcast %191 : vector<8x1xf32> to vector<8x32xf32>
    %193 = arith.subf %183, %192 : vector<8x32xf32>
    %194 = arith.mulf %193, %193 : vector<8x32xf32>
    %cst_136 = arith.constant dense<0.000000e+00> : vector<8xf32>
    %195 = vector.multi_reduction <add>, %194, %cst_136 [1] : vector<8x32xf32> to vector<8xf32>
    %196 = vector.shape_cast %195 : vector<8xf32> to vector<8x1xf32>
    %cst_137 = arith.constant 3.200000e+01 : f32
    %197 = vector.broadcast %cst_137 : f32 to vector<8x1xf32>
    %198 = arith.divf %196, %197 : vector<8x1xf32>
    %199 = vector.broadcast %191 : vector<8x1xf32> to vector<8x32xf32>
    %200 = arith.subf %183, %199 : vector<8x32xf32>
    %cst_138 = arith.constant 9.99999997E-7 : f32
    %201 = vector.broadcast %cst_138 : f32 to vector<8x1xf32>
    %202 = arith.addf %198, %201 : vector<8x1xf32>
    %203 = math.rsqrt %202 : vector<8x1xf32>
    %204 = vector.broadcast %203 : vector<8x1xf32> to vector<8x32xf32>
    %205 = arith.mulf %200, %204 : vector<8x32xf32>
    %206 = vector.broadcast %185 : vector<1x32xf32> to vector<8x32xf32>
    %207 = arith.mulf %205, %206 : vector<8x32xf32>
    %208 = vector.broadcast %187 : vector<1x32xf32> to vector<8x32xf32>
    %209 = arith.addf %207, %208 : vector<8x32xf32>
    %210 = arith.truncf %209 : vector<8x32xf32> to vector<8x32xbf16>
    %c1_139 = arith.constant 1 : index
    %c0_140 = arith.constant 0 : index
    %c0_141 = arith.constant 0 : index
    %211 = vector.load %arg5[%c1_139, %c0_140, %c0_141] : memref<2x32x96xbf16, #tpu.memory_space<vmem>>, vector<1x32x96xbf16>
    %212 = vector.shape_cast %211 : vector<1x32x96xbf16> to vector<32x96xbf16>
    %cst_142 = arith.constant dense<0.000000e+00> : vector<8x96xf32>
    %213 = tpu.matmul %210, %212, %cst_142 {dimension_numbers = #tpu.dot_dimension_numbers<[1], [0], [0], [1], [0, 0, 1, 1], [], []>} : vector<8x32xbf16>, vector<32x96xbf16>, vector<8x96xf32> -> vector<8x96xf32>
    %c1_143 = arith.constant 1 : index
    %c0_144 = arith.constant 0 : index
    %c0_145 = arith.constant 0 : index
    %214 = vector.load %arg6[%c1_143, %c0_144, %c0_145] : memref<2x1x96xf32, #tpu.memory_space<vmem>>, vector<1x1x96xf32>
    %215 = vector.shape_cast %214 : vector<1x1x96xf32> to vector<1x96xf32>
    %216 = vector.broadcast %215 : vector<1x96xf32> to vector<8x96xf32>
    %217 = arith.addf %213, %216 : vector<8x96xf32>
    %218 = vector.extract_strided_slice %217 {offsets = [0, 0], sizes = [8, 8], strides = [1, 1]} : vector<8x96xf32> to vector<8x8xf32>
    %cst_146 = arith.constant 0.353553385 : f32
    %219 = vector.broadcast %cst_146 : f32 to vector<8x8xf32>
    %220 = arith.mulf %218, %219 : vector<8x8xf32>
    %c0_147 = arith.constant 0 : index
    %c0_148 = arith.constant 0 : index
    %c0_149 = arith.constant 0 : index
    %c0_150 = arith.constant 0 : index
    %221 = vector.load %arg18[%c0_147, %c0_148, %c0_149, %c0_150] : memref<3x4x8x8xf32, #tpu.memory_space<vmem>>, vector<1x1x8x8xf32>
    %222 = vector.shape_cast %221 : vector<1x1x8x8xf32> to vector<8x8xf32>
    %223 = vector.shape_cast %220 : vector<8x8xf32> to vector<1x1x8x8xf32>
    tpu.vector_store %arg18[%c0_147, %c0_148, %c0_149, %c0_150], %223 {strides = array<i32>} : memref<3x4x8x8xf32, #tpu.memory_space<vmem>>, vector<1x1x8x8xf32>,
    %224 = vector.extract_strided_slice %217 {offsets = [0, 32], sizes = [8, 8], strides = [1, 1]} : vector<8x96xf32> to vector<8x8xf32>
    %c1_151 = arith.constant 1 : index
    %c0_152 = arith.constant 0 : index
    %c0_153 = arith.constant 0 : index
    %c0_154 = arith.constant 0 : index
    %225 = vector.load %arg18[%c1_151, %c0_152, %c0_153, %c0_154] : memref<3x4x8x8xf32, #tpu.memory_space<vmem>>, vector<1x1x8x8xf32>
    %226 = vector.shape_cast %225 : vector<1x1x8x8xf32> to vector<8x8xf32>
    %227 = vector.shape_cast %224 : vector<8x8xf32> to vector<1x1x8x8xf32>
    tpu.vector_store %arg18[%c1_151, %c0_152, %c0_153, %c0_154], %227 {strides = array<i32>} : memref<3x4x8x8xf32, #tpu.memory_space<vmem>>, vector<1x1x8x8xf32>,
    %228 = vector.extract_strided_slice %217 {offsets = [0, 64], sizes = [8, 8], strides = [1, 1]} : vector<8x96xf32> to vector<8x8xf32>
    %c2_155 = arith.constant 2 : index
    %c0_156 = arith.constant 0 : index
    %c0_157 = arith.constant 0 : index
    %c0_158 = arith.constant 0 : index
    %229 = vector.load %arg18[%c2_155, %c0_156, %c0_157, %c0_158] : memref<3x4x8x8xf32, #tpu.memory_space<vmem>>, vector<1x1x8x8xf32>
    %230 = vector.shape_cast %229 : vector<1x1x8x8xf32> to vector<8x8xf32>
    %231 = vector.shape_cast %228 : vector<8x8xf32> to vector<1x1x8x8xf32>
    tpu.vector_store %arg18[%c2_155, %c0_156, %c0_157, %c0_158], %231 {strides = array<i32>} : memref<3x4x8x8xf32, #tpu.memory_space<vmem>>, vector<1x1x8x8xf32>,
    %232 = vector.extract_strided_slice %217 {offsets = [0, 8], sizes = [8, 8], strides = [1, 1]} : vector<8x96xf32> to vector<8x8xf32>
    %cst_159 = arith.constant 0.353553385 : f32
    %233 = vector.broadcast %cst_159 : f32 to vector<8x8xf32>
    %234 = arith.mulf %232, %233 : vector<8x8xf32>
    %c0_160 = arith.constant 0 : index
    %c1_161 = arith.constant 1 : index
    %c0_162 = arith.constant 0 : index
    %c0_163 = arith.constant 0 : index
    %235 = vector.load %arg18[%c0_160, %c1_161, %c0_162, %c0_163] : memref<3x4x8x8xf32, #tpu.memory_space<vmem>>, vector<1x1x8x8xf32>
    %236 = vector.shape_cast %235 : vector<1x1x8x8xf32> to vector<8x8xf32>
    %237 = vector.shape_cast %234 : vector<8x8xf32> to vector<1x1x8x8xf32>
    tpu.vector_store %arg18[%c0_160, %c1_161, %c0_162, %c0_163], %237 {strides = array<i32>} : memref<3x4x8x8xf32, #tpu.memory_space<vmem>>, vector<1x1x8x8xf32>,
    %238 = vector.extract_strided_slice %217 {offsets = [0, 40], sizes = [8, 8], strides = [1, 1]} : vector<8x96xf32> to vector<8x8xf32>
    %c1_164 = arith.constant 1 : index
    %c1_165 = arith.constant 1 : index
    %c0_166 = arith.constant 0 : index
    %c0_167 = arith.constant 0 : index
    %239 = vector.load %arg18[%c1_164, %c1_165, %c0_166, %c0_167] : memref<3x4x8x8xf32, #tpu.memory_space<vmem>>, vector<1x1x8x8xf32>
    %240 = vector.shape_cast %239 : vector<1x1x8x8xf32> to vector<8x8xf32>
    %241 = vector.shape_cast %238 : vector<8x8xf32> to vector<1x1x8x8xf32>
    tpu.vector_store %arg18[%c1_164, %c1_165, %c0_166, %c0_167], %241 {strides = array<i32>} : memref<3x4x8x8xf32, #tpu.memory_space<vmem>>, vector<1x1x8x8xf32>,
    %242 = vector.extract_strided_slice %217 {offsets = [0, 72], sizes = [8, 8], strides = [1, 1]} : vector<8x96xf32> to vector<8x8xf32>
    %c2_168 = arith.constant 2 : index
    %c1_169 = arith.constant 1 : index
    %c0_170 = arith.constant 0 : index
    %c0_171 = arith.constant 0 : index
    %243 = vector.load %arg18[%c2_168, %c1_169, %c0_170, %c0_171] : memref<3x4x8x8xf32, #tpu.memory_space<vmem>>, vector<1x1x8x8xf32>
    %244 = vector.shape_cast %243 : vector<1x1x8x8xf32> to vector<8x8xf32>
    %245 = vector.shape_cast %242 : vector<8x8xf32> to vector<1x1x8x8xf32>
    tpu.vector_store %arg18[%c2_168, %c1_169, %c0_170, %c0_171], %245 {strides = array<i32>} : memref<3x4x8x8xf32, #tpu.memory_space<vmem>>, vector<1x1x8x8xf32>,
    %246 = vector.extract_strided_slice %217 {offsets = [0, 16], sizes = [8, 8], strides = [1, 1]} : vector<8x96xf32> to vector<8x8xf32>
    %cst_172 = arith.constant 0.353553385 : f32
    %247 = vector.broadcast %cst_172 : f32 to vector<8x8xf32>
    %248 = arith.mulf %246, %247 : vector<8x8xf32>
    %c0_173 = arith.constant 0 : index
    %c2_174 = arith.constant 2 : index
    %c0_175 = arith.constant 0 : index
    %c0_176 = arith.constant 0 : index
    %249 = vector.load %arg18[%c0_173, %c2_174, %c0_175, %c0_176] : memref<3x4x8x8xf32, #tpu.memory_space<vmem>>, vector<1x1x8x8xf32>
    %250 = vector.shape_cast %249 : vector<1x1x8x8xf32> to vector<8x8xf32>
    %251 = vector.shape_cast %248 : vector<8x8xf32> to vector<1x1x8x8xf32>
    tpu.vector_store %arg18[%c0_173, %c2_174, %c0_175, %c0_176], %251 {strides = array<i32>} : memref<3x4x8x8xf32, #tpu.memory_space<vmem>>, vector<1x1x8x8xf32>,
    %252 = vector.extract_strided_slice %217 {offsets = [0, 48], sizes = [8, 8], strides = [1, 1]} : vector<8x96xf32> to vector<8x8xf32>
    %c1_177 = arith.constant 1 : index
    %c2_178 = arith.constant 2 : index
    %c0_179 = arith.constant 0 : index
    %c0_180 = arith.constant 0 : index
    %253 = vector.load %arg18[%c1_177, %c2_178, %c0_179, %c0_180] : memref<3x4x8x8xf32, #tpu.memory_space<vmem>>, vector<1x1x8x8xf32>
    %254 = vector.shape_cast %253 : vector<1x1x8x8xf32> to vector<8x8xf32>
    %255 = vector.shape_cast %252 : vector<8x8xf32> to vector<1x1x8x8xf32>
    tpu.vector_store %arg18[%c1_177, %c2_178, %c0_179, %c0_180], %255 {strides = array<i32>} : memref<3x4x8x8xf32, #tpu.memory_space<vmem>>, vector<1x1x8x8xf32>,
    %256 = vector.extract_strided_slice %217 {offsets = [0, 80], sizes = [8, 8], strides = [1, 1]} : vector<8x96xf32> to vector<8x8xf32>
    %c2_181 = arith.constant 2 : index
    %c2_182 = arith.constant 2 : index
    %c0_183 = arith.constant 0 : index
    %c0_184 = arith.constant 0 : index
    %257 = vector.load %arg18[%c2_181, %c2_182, %c0_183, %c0_184] : memref<3x4x8x8xf32, #tpu.memory_space<vmem>>, vector<1x1x8x8xf32>
    %258 = vector.shape_cast %257 : vector<1x1x8x8xf32> to vector<8x8xf32>
    %259 = vector.shape_cast %256 : vector<8x8xf32> to vector<1x1x8x8xf32>
    tpu.vector_store %arg18[%c2_181, %c2_182, %c0_183, %c0_184], %259 {strides = array<i32>} : memref<3x4x8x8xf32, #tpu.memory_space<vmem>>, vector<1x1x8x8xf32>,
    %260 = vector.extract_strided_slice %217 {offsets = [0, 24], sizes = [8, 8], strides = [1, 1]} : vector<8x96xf32> to vector<8x8xf32>
    %cst_185 = arith.constant 0.353553385 : f32
    %261 = vector.broadcast %cst_185 : f32 to vector<8x8xf32>
    %262 = arith.mulf %260, %261 : vector<8x8xf32>
    %c0_186 = arith.constant 0 : index
    %c3_187 = arith.constant 3 : index
    %c0_188 = arith.constant 0 : index
    %c0_189 = arith.constant 0 : index
    %263 = vector.load %arg18[%c0_186, %c3_187, %c0_188, %c0_189] : memref<3x4x8x8xf32, #tpu.memory_space<vmem>>, vector<1x1x8x8xf32>
    %264 = vector.shape_cast %263 : vector<1x1x8x8xf32> to vector<8x8xf32>
    %265 = vector.shape_cast %262 : vector<8x8xf32> to vector<1x1x8x8xf32>
    tpu.vector_store %arg18[%c0_186, %c3_187, %c0_188, %c0_189], %265 {strides = array<i32>} : memref<3x4x8x8xf32, #tpu.memory_space<vmem>>, vector<1x1x8x8xf32>,
    %266 = vector.extract_strided_slice %217 {offsets = [0, 56], sizes = [8, 8], strides = [1, 1]} : vector<8x96xf32> to vector<8x8xf32>
    %c1_190 = arith.constant 1 : index
    %c3_191 = arith.constant 3 : index
    %c0_192 = arith.constant 0 : index
    %c0_193 = arith.constant 0 : index
    %267 = vector.load %arg18[%c1_190, %c3_191, %c0_192, %c0_193] : memref<3x4x8x8xf32, #tpu.memory_space<vmem>>, vector<1x1x8x8xf32>
    %268 = vector.shape_cast %267 : vector<1x1x8x8xf32> to vector<8x8xf32>
    %269 = vector.shape_cast %266 : vector<8x8xf32> to vector<1x1x8x8xf32>
    tpu.vector_store %arg18[%c1_190, %c3_191, %c0_192, %c0_193], %269 {strides = array<i32>} : memref<3x4x8x8xf32, #tpu.memory_space<vmem>>, vector<1x1x8x8xf32>,
    %270 = vector.extract_strided_slice %217 {offsets = [0, 88], sizes = [8, 8], strides = [1, 1]} : vector<8x96xf32> to vector<8x8xf32>
    %c2_194 = arith.constant 2 : index
    %c3_195 = arith.constant 3 : index
    %c0_196 = arith.constant 0 : index
    %c0_197 = arith.constant 0 : index
    %271 = vector.load %arg18[%c2_194, %c3_195, %c0_196, %c0_197] : memref<3x4x8x8xf32, #tpu.memory_space<vmem>>, vector<1x1x8x8xf32>
    %272 = vector.shape_cast %271 : vector<1x1x8x8xf32> to vector<8x8xf32>
    %273 = vector.shape_cast %270 : vector<8x8xf32> to vector<1x1x8x8xf32>
    tpu.vector_store %arg18[%c2_194, %c3_195, %c0_196, %c0_197], %273 {strides = array<i32>} : memref<3x4x8x8xf32, #tpu.memory_space<vmem>>, vector<1x1x8x8xf32>,
    %c0_198 = arith.constant 0 : index
    %c0_199 = arith.constant 0 : index
    %c0_200 = arith.constant 0 : index
    %c0_201 = arith.constant 0 : index
    %274 = vector.load %arg18[%c0_198, %c0_199, %c0_200, %c0_201] : memref<3x4x8x8xf32, #tpu.memory_space<vmem>>, vector<1x4x8x8xf32>
    %275 = vector.shape_cast %274 : vector<1x4x8x8xf32> to vector<4x8x8xf32>
    %c1_202 = arith.constant 1 : index
    %c0_203 = arith.constant 0 : index
    %c0_204 = arith.constant 0 : index
    %c0_205 = arith.constant 0 : index
    %276 = vector.load %arg18[%c1_202, %c0_203, %c0_204, %c0_205] : memref<3x4x8x8xf32, #tpu.memory_space<vmem>>, vector<1x4x8x8xf32>
    %277 = vector.shape_cast %276 : vector<1x4x8x8xf32> to vector<4x8x8xf32>
    %c2_206 = arith.constant 2 : index
    %c0_207 = arith.constant 0 : index
    %c0_208 = arith.constant 0 : index
    %c0_209 = arith.constant 0 : index
    %278 = vector.load %arg18[%c2_206, %c0_207, %c0_208, %c0_209] : memref<3x4x8x8xf32, #tpu.memory_space<vmem>>, vector<1x4x8x8xf32>
    %279 = vector.shape_cast %278 : vector<1x4x8x8xf32> to vector<4x8x8xf32>
    "tpu.trace_start"() <{level = 10 : i32, message = "hqd,hkd->hqk"}> : () -> ()
    %cst_210 = arith.constant dense<0.000000e+00> : vector<4x8x8xf32>
    %280 = tpu.matmul %275, %277, %cst_210 {dimension_numbers = #tpu.dot_dimension_numbers<[2], [2], [1], [1], [0, 0, 0, 1, 1, 1], [0], [0]>} : vector<4x8x8xf32>, vector<4x8x8xf32>, vector<4x8x8xf32> -> vector<4x8x8xf32>
    "tpu.trace_stop"() : () -> ()
    %281 = vector.shape_cast %5 : vector<1x8xf32> to vector<1x1x8xf32>
    %282 = vector.broadcast %281 : vector<1x1x8xf32> to vector<4x8x8xf32>
    %283 = arith.addf %280, %282 : vector<4x8x8xf32>
    %cst_211 = arith.constant dense<0xFF800000> : vector<4x8xf32>
    %284 = vector.multi_reduction <maximumf>, %283, %cst_211 [2] : vector<4x8x8xf32> to vector<4x8xf32>
    %285 = vector.shape_cast %284 : vector<4x8xf32> to vector<4x8x1xf32>
    %286 = vector.broadcast %285 : vector<4x8x1xf32> to vector<4x8x8xf32>
    %287 = arith.subf %283, %286 : vector<4x8x8xf32>
    %288 = math.exp %287 : vector<4x8x8xf32>
    %cst_212 = arith.constant dense<0.000000e+00> : vector<4x8xf32>
    %289 = vector.multi_reduction <add>, %288, %cst_212 [2] : vector<4x8x8xf32> to vector<4x8xf32>
    %290 = vector.shape_cast %289 : vector<4x8xf32> to vector<4x8x1xf32>
    %291 = tpu.reciprocal %290 {approx = true} : vector<4x8x1xf32> -> vector<4x8x1xf32>
    %292 = vector.broadcast %291 : vector<4x8x1xf32> to vector<4x8x8xf32>
    %293 = arith.mulf %288, %292 : vector<4x8x8xf32>
    "tpu.trace_start"() <{level = 10 : i32, message = "hqk,hkd->hqd"}> : () -> ()
    %cst_213 = arith.constant dense<0.000000e+00> : vector<4x8x8xf32>
    %294 = tpu.matmul %293, %279, %cst_213 {dimension_numbers = #tpu.dot_dimension_numbers<[2], [1], [1], [2], [0, 0, 0, 1, 1, 2], [0], [0]>} : vector<4x8x8xf32>, vector<4x8x8xf32>, vector<4x8x8xf32> -> vector<4x8x8xf32>
    "tpu.trace_stop"() : () -> ()
    %295 = vector.extract_strided_slice %294 {offsets = [0, 0, 0], sizes = [1, 8, 8], strides = [1, 1, 1]} : vector<4x8x8xf32> to vector<1x8x8xf32>
    %296 = vector.shape_cast %295 : vector<1x8x8xf32> to vector<8x8xf32>
    %c0_214 = arith.constant 0 : index
    %c0_215 = arith.constant 0 : index
    %297 = vector.load %arg19[%c0_214, %c0_215] : memref<8x32xf32, #tpu.memory_space<vmem>>, vector<8x8xf32>
    tpu.vector_store %arg19[%c0_214, %c0_215], %296 {strides = array<i32>} : memref<8x32xf32, #tpu.memory_space<vmem>>, vector<8x8xf32>,
    %298 = vector.extract_strided_slice %294 {offsets = [1, 0, 0], sizes = [1, 8, 8], strides = [1, 1, 1]} : vector<4x8x8xf32> to vector<1x8x8xf32>
    %299 = vector.shape_cast %298 : vector<1x8x8xf32> to vector<8x8xf32>
    %c0_216 = arith.constant 0 : index
    %c8_217 = arith.constant 8 : index
    %300 = vector.load %arg19[%c0_216, %c8_217] : memref<8x32xf32, #tpu.memory_space<vmem>>, vector<8x8xf32>
    tpu.vector_store %arg19[%c0_216, %c8_217], %299 {strides = array<i32>} : memref<8x32xf32, #tpu.memory_space<vmem>>, vector<8x8xf32>,
    %301 = vector.extract_strided_slice %294 {offsets = [2, 0, 0], sizes = [1, 8, 8], strides = [1, 1, 1]} : vector<4x8x8xf32> to vector<1x8x8xf32>
    %302 = vector.shape_cast %301 : vector<1x8x8xf32> to vector<8x8xf32>
    %c0_218 = arith.constant 0 : index
    %c16_219 = arith.constant 16 : index
    %303 = vector.load %arg19[%c0_218, %c16_219] : memref<8x32xf32, #tpu.memory_space<vmem>>, vector<8x8xf32>
    tpu.vector_store %arg19[%c0_218, %c16_219], %302 {strides = array<i32>} : memref<8x32xf32, #tpu.memory_space<vmem>>, vector<8x8xf32>,
    %304 = vector.extract_strided_slice %294 {offsets = [3, 0, 0], sizes = [1, 8, 8], strides = [1, 1, 1]} : vector<4x8x8xf32> to vector<1x8x8xf32>
    %305 = vector.shape_cast %304 : vector<1x8x8xf32> to vector<8x8xf32>
    %c0_220 = arith.constant 0 : index
    %c24_221 = arith.constant 24 : index
    %306 = vector.load %arg19[%c0_220, %c24_221] : memref<8x32xf32, #tpu.memory_space<vmem>>, vector<8x8xf32>
    tpu.vector_store %arg19[%c0_220, %c24_221], %305 {strides = array<i32>} : memref<8x32xf32, #tpu.memory_space<vmem>>, vector<8x8xf32>,
    %c0_222 = arith.constant 0 : index
    %c0_223 = arith.constant 0 : index
    %307 = vector.load %arg19[%c0_222, %c0_223] : memref<8x32xf32, #tpu.memory_space<vmem>>, vector<8x32xf32>
    %308 = arith.truncf %307 : vector<8x32xf32> to vector<8x32xbf16>
    %c1_224 = arith.constant 1 : index
    %c0_225 = arith.constant 0 : index
    %c0_226 = arith.constant 0 : index
    %309 = vector.load %arg7[%c1_224, %c0_225, %c0_226] : memref<2x32x32xbf16, #tpu.memory_space<vmem>>, vector<1x32x32xbf16>
    %310 = vector.shape_cast %309 : vector<1x32x32xbf16> to vector<32x32xbf16>
    %cst_227 = arith.constant dense<0.000000e+00> : vector<8x32xf32>
    %311 = tpu.matmul %308, %310, %cst_227 {dimension_numbers = #tpu.dot_dimension_numbers<[1], [0], [0], [1], [0, 0, 1, 1], [], []>} : vector<8x32xbf16>, vector<32x32xbf16>, vector<8x32xf32> -> vector<8x32xf32>
    %c1_228 = arith.constant 1 : index
    %c0_229 = arith.constant 0 : index
    %c0_230 = arith.constant 0 : index
    %312 = vector.load %arg8[%c1_228, %c0_229, %c0_230] : memref<2x1x32xf32, #tpu.memory_space<vmem>>, vector<1x1x32xf32>
    %313 = vector.shape_cast %312 : vector<1x1x32xf32> to vector<1x32xf32>
    %314 = vector.broadcast %313 : vector<1x32xf32> to vector<8x32xf32>
    %315 = arith.addf %311, %314 : vector<8x32xf32>
    %316 = arith.addf %183, %315 : vector<8x32xf32>
    %c1_231 = arith.constant 1 : index
    %c0_232 = arith.constant 0 : index
    %c0_233 = arith.constant 0 : index
    %317 = vector.load %arg9[%c1_231, %c0_232, %c0_233] : memref<2x1x32xf32, #tpu.memory_space<vmem>>, vector<1x1x32xf32>
    %318 = vector.shape_cast %317 : vector<1x1x32xf32> to vector<1x32xf32>
    %c1_234 = arith.constant 1 : index
    %c0_235 = arith.constant 0 : index
    %c0_236 = arith.constant 0 : index
    %319 = vector.load %arg10[%c1_234, %c0_235, %c0_236] : memref<2x1x32xf32, #tpu.memory_space<vmem>>, vector<1x1x32xf32>
    %320 = vector.shape_cast %319 : vector<1x1x32xf32> to vector<1x32xf32>
    %cst_237 = arith.constant dense<0.000000e+00> : vector<8xf32>
    %321 = vector.multi_reduction <add>, %316, %cst_237 [1] : vector<8x32xf32> to vector<8xf32>
    %322 = vector.shape_cast %321 : vector<8xf32> to vector<8x1xf32>
    %cst_238 = arith.constant 3.200000e+01 : f32
    %323 = vector.broadcast %cst_238 : f32 to vector<8x1xf32>
    %324 = arith.divf %322, %323 : vector<8x1xf32>
    %325 = vector.broadcast %324 : vector<8x1xf32> to vector<8x32xf32>
    %326 = arith.subf %316, %325 : vector<8x32xf32>
    %327 = arith.mulf %326, %326 : vector<8x32xf32>
    %cst_239 = arith.constant dense<0.000000e+00> : vector<8xf32>
    %328 = vector.multi_reduction <add>, %327, %cst_239 [1] : vector<8x32xf32> to vector<8xf32>
    %329 = vector.shape_cast %328 : vector<8xf32> to vector<8x1xf32>
    %cst_240 = arith.constant 3.200000e+01 : f32
    %330 = vector.broadcast %cst_240 : f32 to vector<8x1xf32>
    %331 = arith.divf %329, %330 : vector<8x1xf32>
    %332 = vector.broadcast %324 : vector<8x1xf32> to vector<8x32xf32>
    %333 = arith.subf %316, %332 : vector<8x32xf32>
    %cst_241 = arith.constant 9.99999997E-7 : f32
    %334 = vector.broadcast %cst_241 : f32 to vector<8x1xf32>
    %335 = arith.addf %331, %334 : vector<8x1xf32>
    %336 = math.rsqrt %335 : vector<8x1xf32>
    %337 = vector.broadcast %336 : vector<8x1xf32> to vector<8x32xf32>
    %338 = arith.mulf %333, %337 : vector<8x32xf32>
    %339 = vector.broadcast %318 : vector<1x32xf32> to vector<8x32xf32>
    %340 = arith.mulf %338, %339 : vector<8x32xf32>
    %341 = vector.broadcast %320 : vector<1x32xf32> to vector<8x32xf32>
    %342 = arith.addf %340, %341 : vector<8x32xf32>
    %343 = arith.truncf %342 : vector<8x32xf32> to vector<8x32xbf16>
    %c1_242 = arith.constant 1 : index
    %c0_243 = arith.constant 0 : index
    %c0_244 = arith.constant 0 : index
    %344 = vector.load %arg11[%c1_242, %c0_243, %c0_244] : memref<2x32x64xbf16, #tpu.memory_space<vmem>>, vector<1x32x64xbf16>
    %345 = vector.shape_cast %344 : vector<1x32x64xbf16> to vector<32x64xbf16>
    %cst_245 = arith.constant dense<0.000000e+00> : vector<8x64xf32>
    %346 = tpu.matmul %343, %345, %cst_245 {dimension_numbers = #tpu.dot_dimension_numbers<[1], [0], [0], [1], [0, 0, 1, 1], [], []>} : vector<8x32xbf16>, vector<32x64xbf16>, vector<8x64xf32> -> vector<8x64xf32>
    %c1_246 = arith.constant 1 : index
    %c0_247 = arith.constant 0 : index
    %c0_248 = arith.constant 0 : index
    %347 = vector.load %arg12[%c1_246, %c0_247, %c0_248] : memref<2x1x64xf32, #tpu.memory_space<vmem>>, vector<1x1x64xf32>
    %348 = vector.shape_cast %347 : vector<1x1x64xf32> to vector<1x64xf32>
    %349 = vector.broadcast %348 : vector<1x64xf32> to vector<8x64xf32>
    %350 = arith.addf %346, %349 : vector<8x64xf32>
    %cst_249 = arith.constant 0.000000e+00 : f32
    %351 = vector.broadcast %cst_249 : f32 to vector<8x64xf32>
    %352 = arith.maximumf %350, %351 : vector<8x64xf32>
    %353 = arith.truncf %352 : vector<8x64xf32> to vector<8x64xbf16>
    %c1_250 = arith.constant 1 : index
    %c0_251 = arith.constant 0 : index
    %c0_252 = arith.constant 0 : index
    %354 = vector.load %arg13[%c1_250, %c0_251, %c0_252] : memref<2x64x32xbf16, #tpu.memory_space<vmem>>, vector<1x64x32xbf16>
    %355 = vector.shape_cast %354 : vector<1x64x32xbf16> to vector<64x32xbf16>
    %cst_253 = arith.constant dense<0.000000e+00> : vector<8x32xf32>
    %356 = tpu.matmul %353, %355, %cst_253 {dimension_numbers = #tpu.dot_dimension_numbers<[1], [0], [0], [1], [0, 0, 1, 1], [], []>} : vector<8x64xbf16>, vector<64x32xbf16>, vector<8x32xf32> -> vector<8x32xf32>
    %357 = arith.addf %316, %356 : vector<8x32xf32>
    %c1_254 = arith.constant 1 : index
    %c0_255 = arith.constant 0 : index
    %c0_256 = arith.constant 0 : index
    %358 = vector.load %arg14[%c1_254, %c0_255, %c0_256] : memref<2x1x32xf32, #tpu.memory_space<vmem>>, vector<1x1x32xf32>
    %359 = vector.shape_cast %358 : vector<1x1x32xf32> to vector<1x32xf32>
    %360 = vector.broadcast %359 : vector<1x32xf32> to vector<8x32xf32>
    %361 = arith.addf %357, %360 : vector<8x32xf32>
    %c0_257 = arith.constant 0 : index
    %c0_258 = arith.constant 0 : index
    %362 = vector.load %arg15[%c0_257, %c0_258] : memref<1x32xf32, #tpu.memory_space<vmem>>, vector<1x32xf32>
    %c0_259 = arith.constant 0 : index
    %c0_260 = arith.constant 0 : index
    %363 = vector.load %arg16[%c0_259, %c0_260] : memref<1x32xf32, #tpu.memory_space<vmem>>, vector<1x32xf32>
    %cst_261 = arith.constant dense<0.000000e+00> : vector<8xf32>
    %364 = vector.multi_reduction <add>, %361, %cst_261 [1] : vector<8x32xf32> to vector<8xf32>
    %365 = vector.shape_cast %364 : vector<8xf32> to vector<8x1xf32>
    %cst_262 = arith.constant 3.200000e+01 : f32
    %366 = vector.broadcast %cst_262 : f32 to vector<8x1xf32>
    %367 = arith.divf %365, %366 : vector<8x1xf32>
    %368 = vector.broadcast %367 : vector<8x1xf32> to vector<8x32xf32>
    %369 = arith.subf %361, %368 : vector<8x32xf32>
    %370 = arith.mulf %369, %369 : vector<8x32xf32>
    %cst_263 = arith.constant dense<0.000000e+00> : vector<8xf32>
    %371 = vector.multi_reduction <add>, %370, %cst_263 [1] : vector<8x32xf32> to vector<8xf32>
    %372 = vector.shape_cast %371 : vector<8xf32> to vector<8x1xf32>
    %cst_264 = arith.constant 3.200000e+01 : f32
    %373 = vector.broadcast %cst_264 : f32 to vector<8x1xf32>
    %374 = arith.divf %372, %373 : vector<8x1xf32>
    %375 = vector.broadcast %367 : vector<8x1xf32> to vector<8x32xf32>
    %376 = arith.subf %361, %375 : vector<8x32xf32>
    %cst_265 = arith.constant 9.99999997E-7 : f32
    %377 = vector.broadcast %cst_265 : f32 to vector<8x1xf32>
    %378 = arith.addf %374, %377 : vector<8x1xf32>
    %379 = math.rsqrt %378 : vector<8x1xf32>
    %380 = vector.broadcast %379 : vector<8x1xf32> to vector<8x32xf32>
    %381 = arith.mulf %376, %380 : vector<8x32xf32>
    %382 = vector.broadcast %362 : vector<1x32xf32> to vector<8x32xf32>
    %383 = arith.mulf %381, %382 : vector<8x32xf32>
    %384 = vector.broadcast %363 : vector<1x32xf32> to vector<8x32xf32>
    %385 = arith.addf %383, %384 : vector<8x32xf32>
    %c0_266 = arith.constant 0 : index
    %c0_267 = arith.constant 0 : index
    %c0_268 = arith.constant 0 : index
    %386 = vector.load %arg17[%c0_266, %c0_267, %c0_268] : memref<1x8x32xf32, #tpu.memory_space<vmem>>, vector<1x8x32xf32>
    %387 = vector.shape_cast %386 : vector<1x8x32xf32> to vector<8x32xf32>
    %388 = vector.shape_cast %385 : vector<8x32xf32> to vector<1x8x32xf32>
    tpu.vector_store %arg17[%c0_266, %c0_267, %c0_268], %388 {strides = array<i32>} : memref<1x8x32xf32, #tpu.memory_space<vmem>>, vector<1x8x32xf32>,
    return
  }
  func.func @transform_0(%arg0: i32) -> (i32, i32, i32) {
    %c0_i32 = arith.constant 0 : i32
    %c0_i32_0 = arith.constant 0 : i32
    %c0_i32_1 = arith.constant 0 : i32
    return %arg0, %c0_i32, %c0_i32_0 : i32, i32, i32
  }
  func.func @transform_1(%arg0: i32) -> (i32, i32, i32) {
    %c0_i32 = arith.constant 0 : i32
    %c0_i32_0 = arith.constant 0 : i32
    %c0_i32_1 = arith.constant 0 : i32
    return %arg0, %c0_i32, %c0_i32_0 : i32, i32, i32
  }
  func.func @transform_2(%arg0: i32) -> (i32, i32, i32) {
    %c0_i32 = arith.constant 0 : i32
    %c0_i32_0 = arith.constant 0 : i32
    %c0_i32_1 = arith.constant 0 : i32
    %c0_i32_2 = arith.constant 0 : i32
    return %c0_i32, %c0_i32_0, %c0_i32_1 : i32, i32, i32
  }
  func.func @transform_3(%arg0: i32) -> (i32, i32, i32) {
    %c0_i32 = arith.constant 0 : i32
    %c0_i32_0 = arith.constant 0 : i32
    %c0_i32_1 = arith.constant 0 : i32
    %c0_i32_2 = arith.constant 0 : i32
    return %c0_i32, %c0_i32_0, %c0_i32_1 : i32, i32, i32
  }
  func.func @transform_4(%arg0: i32) -> (i32, i32, i32) {
    %c0_i32 = arith.constant 0 : i32
    %c0_i32_0 = arith.constant 0 : i32
    %c0_i32_1 = arith.constant 0 : i32
    %c0_i32_2 = arith.constant 0 : i32
    return %c0_i32, %c0_i32_0, %c0_i32_1 : i32, i32, i32
  }
  func.func @transform_5(%arg0: i32) -> (i32, i32, i32) {
    %c0_i32 = arith.constant 0 : i32
    %c0_i32_0 = arith.constant 0 : i32
    %c0_i32_1 = arith.constant 0 : i32
    %c0_i32_2 = arith.constant 0 : i32
    return %c0_i32, %c0_i32_0, %c0_i32_1 : i32, i32, i32
  }
  func.func @transform_6(%arg0: i32) -> (i32, i32, i32) {
    %c0_i32 = arith.constant 0 : i32
    %c0_i32_0 = arith.constant 0 : i32
    %c0_i32_1 = arith.constant 0 : i32
    %c0_i32_2 = arith.constant 0 : i32
    return %c0_i32, %c0_i32_0, %c0_i32_1 : i32, i32, i32
  }
  func.func @transform_7(%arg0: i32) -> (i32, i32, i32) {
    %c0_i32 = arith.constant 0 : i32
    %c0_i32_0 = arith.constant 0 : i32
    %c0_i32_1 = arith.constant 0 : i32
    %c0_i32_2 = arith.constant 0 : i32
    return %c0_i32, %c0_i32_0, %c0_i32_1 : i32, i32, i32
  }
  func.func @transform_8(%arg0: i32) -> (i32, i32, i32) {
    %c0_i32 = arith.constant 0 : i32
    %c0_i32_0 = arith.constant 0 : i32
    %c0_i32_1 = arith.constant 0 : i32
    %c0_i32_2 = arith.constant 0 : i32
    return %c0_i32, %c0_i32_0, %c0_i32_1 : i32, i32, i32
  }
  func.func @transform_9(%arg0: i32) -> (i32, i32, i32) {
    %c0_i32 = arith.constant 0 : i32
    %c0_i32_0 = arith.constant 0 : i32
    %c0_i32_1 = arith.constant 0 : i32
    %c0_i32_2 = arith.constant 0 : i32
    return %c0_i32, %c0_i32_0, %c0_i32_1 : i32, i32, i32
  }
  func.func @transform_10(%arg0: i32) -> (i32, i32, i32) {
    %c0_i32 = arith.constant 0 : i32
    %c0_i32_0 = arith.constant 0 : i32
    %c0_i32_1 = arith.constant 0 : i32
    %c0_i32_2 = arith.constant 0 : i32
    return %c0_i32, %c0_i32_0, %c0_i32_1 : i32, i32, i32
  }
  func.func @transform_11(%arg0: i32) -> (i32, i32, i32) {
    %c0_i32 = arith.constant 0 : i32
    %c0_i32_0 = arith.constant 0 : i32
    %c0_i32_1 = arith.constant 0 : i32
    %c0_i32_2 = arith.constant 0 : i32
    return %c0_i32, %c0_i32_0, %c0_i32_1 : i32, i32, i32
  }
  func.func @transform_12(%arg0: i32) -> (i32, i32, i32) {
    %c0_i32 = arith.constant 0 : i32
    %c0_i32_0 = arith.constant 0 : i32
    %c0_i32_1 = arith.constant 0 : i32
    %c0_i32_2 = arith.constant 0 : i32
    return %c0_i32, %c0_i32_0, %c0_i32_1 : i32, i32, i32
  }
  func.func @transform_13(%arg0: i32) -> (i32, i32, i32) {
    %c0_i32 = arith.constant 0 : i32
    %c0_i32_0 = arith.constant 0 : i32
    %c0_i32_1 = arith.constant 0 : i32
    %c0_i32_2 = arith.constant 0 : i32
    return %c0_i32, %c0_i32_0, %c0_i32_1 : i32, i32, i32
  }
  func.func @transform_14(%arg0: i32) -> (i32, i32) {
    %c0_i32 = arith.constant 0 : i32
    %c0_i32_0 = arith.constant 0 : i32
    %c0_i32_1 = arith.constant 0 : i32
    return %c0_i32, %c0_i32_0 : i32, i32
  }
  func.func @transform_15(%arg0: i32) -> (i32, i32) {
    %c0_i32 = arith.constant 0 : i32
    %c0_i32_0 = arith.constant 0 : i32
    %c0_i32_1 = arith.constant 0 : i32
    return %c0_i32, %c0_i32_0 : i32, i32
  }
  func.func @transform_16(%arg0: i32) -> (i32, i32, i32) {
    %c0_i32 = arith.constant 0 : i32
    %c0_i32_0 = arith.constant 0 : i32
    %c0_i32_1 = arith.constant 0 : i32
    return %arg0, %c0_i32, %c0_i32_0 : i32, i32, i32
  }
}

</mosaic_0001>

<bundles_post_ra>
// kernel: tpu_custom_call.1
= control target key start
LH: loop header
LB: loop body
LE: loop exit
PB: predicated region body
PF: predicated region fallthrough
CT: control target
= control target key end

     0   :  { %s4107_s0 = inlined_call_operand.hbm [shape: f32[2,8,32], index: 0, kind: input, shape index: {}]   ;;  %s4108_s1 = inlined_call_operand.hbm [shape: f32[2,1,8], index: 1, kind: input, shape index: {}]   ;;  %s4109_s2 = inlined_call_operand.vmem [shape: f32[2,1,32], index: 2, kind: input, shape index: {}]   ;;  %s4110_s3 = inlined_call_operand.vmem [shape: f32[2,1,32], index: 3, kind: input, shape index: {}]   ;;  %s4111_s4 = inlined_call_operand.vmem [shape: bf16[2,32,96], index: 4, kind: input, shape index: {}]   ;;  %s4112_s5 = inlined_call_operand.vmem [shape: f32[2,1,96], index: 5, kind: input, shape index: {}]   ;;  %s4113_s6 = inlined_call_operand.vmem [shape: bf16[2,32,32], index: 6, kind: input, shape index: {}]   ;;  %s4114_s7 = inlined_call_operand.vmem [shape: f32[2,1,32], index: 7, kind: input, shape index: {}]   ;;  %s4115_s8 = inlined_call_operand.vmem [shape: f32[2,1,32], index: 8, kind: input, shape index: {}]   ;;  %s4116_s9 = inlined_call_operand.vmem [shape: f32[2,1,32], index: 9, kind: input, shape index: {}]   ;;  %s4117_s10 = inlined_call_operand.vmem [shape: bf16[2,32,64], index: 10, kind: input, shape index: {}]   ;;  %s4118_s11 = inlined_call_operand.vmem [shape: f32[2,1,64], index: 11, kind: input, shape index: {}]   ;;  %s4119_s12 = inlined_call_operand.vmem [shape: bf16[2,64,32], index: 12, kind: input, shape index: {}]   ;;  %s4120_s13 = inlined_call_operand.vmem [shape: f32[2,1,32], index: 13, kind: input, shape index: {}]   ;;  %s4121_s14 = inlined_call_operand.vmem [shape: f32[1,32], index: 14, kind: input, shape index: {}]   ;;  %s4122_s15 = inlined_call_operand.vmem [shape: f32[1,32], index: 15, kind: input, shape index: {}]   ;;  %s4123_s16 = inlined_call_operand.hbm [shape: f32[2,8,32], index: 16, kind: output, shape index: {}]  }
   0x1   :  { %4145 = sst [smem:[#allocation19_spill]] %s4107_s0 }
   0x2   :  { %4146 = sst [smem:[#allocation20_spill]] %s4108_s1 }
   0x3   :  { %4147 = sst [smem:[#allocation21_spill]] %s4109_s2 }
   0x4   :  { %4148 = sst [smem:[#allocation22_spill]] %s4121_s14 }
   0x5   :  { %4149 = sst [smem:[#allocation23_spill]] %s4122_s15 }
   0x6   :  { %4150 = sst [smem:[#allocation24_spill]] %s4123_s16 }
   0x7   :  { %21 = vsyncpa [#allocation5], 0 }
   0x8   :  { %23 = vsyncpa [#allocation5 + $0x1], 0 }
   0x9   :  { %24 = vsyncpa [#allocation8], 0 }
   0xa   :  { %26 = vsyncpa [#allocation8 + $0x1], 0 }
   0xb   :  { %27 = vsyncpa [#allocation6], 0 }
   0xc   :  { %29 = vsyncpa [#allocation6 + $0x1], 0  ;;  %s3553_s21 = smov 0   ;;  %s3555_s22 = smov 0  }
   0xd   :  { %s3557_s23 = smov 0   ;;  %s3559_s24 = smov 0  }
   0xe LB: > { %4151 = sst [smem:[#allocation13_spill]] %s3435_s21  ;;  %s3574_s25 = sadd.s32 4294967295, %s3447_s24   ;;  %s3447_s24 = sphi %s3559_s24, %s4190_s24   ;;  %s3443_s23 = sphi %s3557_s23, %s4192_s23   ;;  %s3439_s22 = sphi %s3555_s22, %s4194_s22   ;;  %s3435_s21 = sphi %s3553_s21, %s4193_s21  }
   0xf   : > { %4152 = sst [smem:[#allocation14_spill]] %s3443_s23  ;;  %s2871_s26 = sadd.s32 4294967294, %s3447_s24  }
  0x10   : > { %s3578_s27 = sadd.s32 1, %s3447_s24   ;;  %s42_s28 = sadd.s32 1, %s3443_s23 }
  0x11   : > { %4153 = sst [smem:[#allocation15_spill]] %s3578_s27  ;;  %s39_s29 = ssub.s32 %s3447_s24, %s3578_s27 }
  0x12   : > { %p49_p0 = scmp.ne.s32.totalorder %s3443_s23, %s3439_s22  ;;  %p40_p1 = scmp.eq.s32.totalorder %s39_s29, 0 }
  0x13   : > { %p50_p2 = scmp.eq.s32.totalorder %s3447_s24, 0  ;;  %p55_p3 = scmp.ne.s32.totalorder %s3439_s22, %s3435_s21 }
  0x14   : > { %p56_p4 = scmp.eq.s32.totalorder %s3574_s25, 0  ;;  %p399_p7 = scmp.eq.s32.totalorder %s3574_s25, 1 }
  0x15   : > { %s3590_s30 = scalar_select %p40_p1, %s3443_s23, %s42_s28  }
  0x16   : > { %p3592_p5 = por %p50_p2, %p49_p0  ;;  %p3596_p6 = por %p56_p4, %p55_p3 }
  0x17   : > { %4154 = sst [smem:[#allocation16_spill]] %s3590_s30  ;;  %p405_p8 = scmp.eq.s32.totalorder %s2871_s26, 1 }
  0x18   : > { %s4156_s17 = scalar_select %p3596_p6, 1, 0 }
  0x19   : > { %p3211_p10 = scmp.lt.s32.totalorder %s3447_s24, 2  ;;  %p3603_p11 = por %p399_p7, %p49_p0 }
  0x1a   : > { %p3607_p12 = por %p405_p8, %p55_p3  ;;  %s3612_s20 = sand.u32 1, %s3443_s23  }
  0x1b   : > { %s4157_s18 = scalar_select %p3603_p11, 1, 0 }
  0x1c   : > { %s4159_s19 = scalar_select %p3607_p12, 1, 0 }
  0x1d   : > { %4158 = sst [smem:[#allocation17_spill]] %s4157_s18  ;;  %s2875_s28 = sshll.u32 %s3447_s24, 7 }
  0x1e   : > { %4160 = sst [smem:[#allocation18_spill]] %s4159_s19  ;;  %s2874_s29 = sshll.u32 %s3612_s20, 3 }
  0x1f   : > { %s4161_s21 = sld [smem:[#allocation19_spill]]  ;;  %s471_s15 = scalar_lea.vmem [#allocation4], %s2874_s29 }
  0x20   : > { %s478_s14 = sshll.u32 %s471_s15, 4  ;;  %p3623_p13 = pnand %p3211_p10, %p3592_p5  ;;  %s3627_s14 = int_to_ptr.vmem [resolvable:$true] %s478_s14 }
  0x21   : > { %s468_s23 = scalar_lea.sflag [#allocation5], %s3612_s20 }
  0x22   : > { %p3325_p3 = pneg %p3623_p13 }
  0x25   : > { %s4162_s16 = smov %s4161_s21  ;;  %s3619_s26 = scalar_lea.hbm %s4161_s21, %s2875_s28 }
  0x26   : > { %s3323_s27 = scalar_lea.hbm %s3619_s26, 128  ;;  %s3328_s30 = scalar_lea.hbm %s4162_s16, 256 }
  0x27   : > { %p3324_p2 = scmp.ne.s32.totalorder %s3619_s26, %s3323_s27  ;;  %p3329_p5 = scmp.lt.s32.totalorder %s3619_s26, %s4162_s16 }
  0x28   : > { %p3330_p8 = scmp.lt.s32.totalorder %s3328_s30, %s3323_s27 }
  0x29   : > { %p3326_p4 = pnand %p3325_p3, %p3324_p2 }
  0x2a   : > { %p3331_p10 = por %p3330_p8, %p3329_p5 }
  0x2b   : > { %p3327_p7 = pneg %p3326_p4 }
  0x2d   : > { %p3332_p9 = pnand %p3331_p10, %p3327_p7 }
  0x2f   : > { %3335 = shalt.err (!%p3332_p9)
}
  0x30   : > { %s3336_s29 = scalar_lea.vmem %s3627_s14, 128  ;;  %s3449_s15 = smov [#allocation4]  }
  0x31   : > { %p3337_p0 = scmp.ne.s32.totalorder %s3627_s14, %s3336_s29  ;;  %s3341_s21 = sshll.u32 %s3449_s15, 4  ;;  %s3342_s21 = int_to_ptr.vmem [resolvable:$false] %s3341_s21 }
  0x32   : > { %s3343_s19 = scalar_lea.vmem %s3342_s21, 256  ;;  %p3344_p1 = scmp.lt.s32.totalorder %s3627_s14, %s3342_s21 }
  0x33   : > { %p3339_p2 = pnand %p3337_p0, %p3325_p3  ;;  %p3345_p12 = scmp.lt.s32.totalorder %s3343_s19, %s3336_s29 }
  0x35   : > { %p3340_p4 = pneg %p3339_p2  ;;  %p3346_p11 = por %p3345_p12, %p3344_p1 }
  0x37   : > { %p3347_p5 = pnand %p3346_p11, %p3340_p4 }
  0x39   : > { %3350 = shalt.err (!%p3347_p5)
}
  0x3a   : > { %3203 = dma.hbm_to_vmem [thread:$0]  (!%p3623_p13), %s3619_s26, 128, %s3627_s14, %s468_s23  }
  0x3b   : > { %p4164_p9 = scmp.lt.s32.totalorder %s3447_s24, 3  ;;  %p4165_p0 = scmp.ge.s32.totalorder %s3447_s24, 1 }
  0x3c   : > { %s2876_s19 = sshll.u32 %s3447_s24, 4  ;;  %s4167_s1 = sld [smem:[#allocation20_spill]] }
  0x3d   : > { %p3660_p7 = pnand %p4165_p0, %p4164_p9  ;;  %s488_s29 = scalar_lea.vmem [#allocation7], %s3612_s20 }
  0x3e   : > { %s495_s15 = sshll.u32 %s488_s29, 4  ;;  %s486_s21 = scalar_lea.sflag [#allocation8], %s3612_s20  ;;  %s496_s15 = int_to_ptr.vmem [resolvable:$true] %s495_s15 }
  0x3f   : > { %s4166_s27 = scalar_select %p3660_p7, 1, 0 }
  0x42   : > { %s3668_s28 = scalar_lea.hbm %s4167_s1, %s2876_s19  ;;  %s3356_s16 = scalar_lea.hbm %s4167_s1, 32 }
  0x43   : > { %s3351_s14 = scalar_lea.hbm %s3668_s28, 16  ;;  %p3357_p8 = scmp.lt.s32.totalorder %s3668_s28, %s4167_s1 }
  0x44   : > { %p3352_p11 = scmp.ne.s32.totalorder %s3668_s28, %s3351_s14  ;;  %p3358_p10 = scmp.lt.s32.totalorder %s3356_s16, %s3351_s14 }
  0x46   : > { %p3354_p12 = pnand %p3352_p11, %p3325_p3  ;;  %p3359_p2 = por %p3358_p10, %p3357_p8 }
  0x48   : > { %p3355_p1 = pneg %p3354_p12 }
  0x4a   : > { %p3360_p4 = pnand %p3359_p2, %p3355_p1 }
  0x4c   : > { %3363 = shalt.err (!%p3360_p4)
}
  0x4d   : > { %s3364_s0 = scalar_lea.vmem %s496_s15, 16  ;;  %s3450_s20 = smov [#allocation7]  }
  0x4e   : > { %p3365_p5 = scmp.ne.s32.totalorder %s496_s15, %s3364_s0  ;;  %s3369_s29 = sshll.u32 %s3450_s20, 4  ;;  %s3370_s29 = int_to_ptr.vmem [resolvable:$false] %s3369_s29 }
  0x4f   : > { %s3371_s23 = scalar_lea.vmem %s3370_s29, 32  ;;  %p3372_p11 = scmp.lt.s32.totalorder %s496_s15, %s3370_s29 }
  0x50   : > { %p3367_p9 = pnand %p3365_p5, %p3325_p3  ;;  %p3373_p12 = scmp.lt.s32.totalorder %s3371_s23, %s3364_s0 }
  0x52   : > { %p3368_p0 = pneg %p3367_p9  ;;  %p3374_p6 = por %p3373_p12, %p3372_p11 }
  0x54   : > { %p3375_p7 = pnand %p3374_p6, %p3368_p0 }
  0x56   : > { %3378 = shalt.err (!%p3375_p7)
}
  0x57   : > { %3206 = dma.hbm_to_vmem [thread:$0]  (!%p3623_p13), %s3668_s28, 16, %s496_s15, %s486_s21  }
  0x58   : > { %p4168_p1 = scmp.ne.s32.totalorder %s4166_s27, 0 }
  0x59   : > { %s3693_s16 = sand.u32 (!%p4168_p1), 1, %s3439_s22   ;;  %p4169_p6 = scmp.ne.s32.totalorder (!%p4168_p1), %s4156_s17, 0 }
  0x5a   : > { %504 = sbr.rel (%p4168_p1) target bundleno = 5167 (0x142f), region = 84  ;;  %s4136_s14 = sshll.u32 (!%p4168_p1), %s3693_s16, 3 }
  0x5b   : > { %s507_s26 = scalar_lea.sflag (!%p4168_p1), [#allocation5], %s3693_s16  ;;  %s510_s30 = scalar_lea.vmem (!%p4168_p1), [#allocation4], %s4136_s14 }
  0x5f   : > { %3422 = dma.done.wait (%p4169_p6), %s507_s26, 128  }
  0x60   : > { %3424 = vsyncadd (%p4169_p6), %s507_s26, 4294967168  ;;  %s516_s18 = scalar_lea.sflag [#allocation8], %s3693_s16  ;;  %s518_s27 = scalar_lea.vmem [#allocation7], %s3693_s16 }
  0x61   : > { %3426 = dma.done.wait (%p4169_p6), %s516_s18, 16  }
  0x62   : > { %3428 = vsyncadd (%p4169_p6), %s516_s18, 4294967280  ;;  %vm577_vm0 = vcmask 261120   ;;  %v3709_v0 = vld [vmem:[%s510_s30] sm:$0xff]  ;;  %v3451_v8 = vmov 0.0   ;;  %vm3452_vm1 = vmmov 0   ;;  %v3262_v9 = vld [vmem:[%s4111_s4] sm:$0xff]   ;;  %v746_v42 = vlaneseq }
  0x63   : > { %v578_v1 = vsel %vm577_vm0, %v3709_v0, 0.0  ;;  %v3261_v7 = vld [vmem:[%s4111_s4 + $0x8] sm:$0xff]   ;;  %3042 = vmatprep.subr.bf16.mxu0 %v3451_v8  ;;  %3046 = vmatprep.mubr.msk.bf16.mxu0 %vm3452_vm1, %v3451_v8  ;;  %s4170_s2 = sld [smem:[#allocation21_spill]]  ;;  %v2881_v16 = vld [vmem:[%s4110_s3] ss:$0 sm:$0xff]  ;;  %vm674_vm2 = vcmask 64512  }
  0x64   : > { %579 = vadd.xlane.f32.xlu0 %v578_v1  ;;  %3043 = vmatpush3.bf16.msra.mxu0 %v3261_v7  ;;  %v2882_v20 = vld [vmem:[%s4112_s5] ss:$0 sm:$0xff]  ;;  %s3453_s30 = smov 96   ;;  %s3454_s18 = smov 120   ;;  %v747_v43 = vshrl.u32 %v746_v42, 7  ;;  %vm1396_vm3 = vcmask 130112  }
  0x65   : > { %3055 = vmatprep.subr.mxu1 %v3451_v8  ;;  %3044 = vmatprep.subr.bf16.mxu0 %v3451_v8  ;;  %s3455_s28 = smov 88   ;;  %s3456_s15 = smov 80   ;;  %v573_v44 = vld [vmem:[%s518_s27] sm:$0x1]  ;;  %vm1402_vm4 = vcmask 195712   ;;  %vm1408_vm5 = vcmask 261312  }
  0x66   : > { %3057 = vmatprep.mubr.msk.f32.mxu1 %vm3452_vm1, %v3451_v8  ;;  %s3457_s17 = smov 72   ;;  %s3458_s21 = smov 112   ;;  %v574_v45 = vmul.f32 -1e+18, %v573_v44  ;;  %v748_v46 = vsub.s32 0, %v747_v43  ;;  %v3263_v44 = vld [vmem:[%s4113_s6 + $0x8] sm:$0xff]  }
  0x67   : > { %s4144_s19 = smov 104   ;;  %s4143_s27 = smov 64   ;;  %vm1609_vm6 = vcmask 523264  }
  0x68   : > { %3045 = vmatpush3.bf16.msra.mxu0 %v3262_v9  ;;  %v3785_v47 = vrot.slane %v574_v45, %v748_v46  ;;  %s4139_s0 = smov 48   ;;  %s4138_s20 = smov 40   ;;  %v3264_v45 = vld [vmem:[%s4113_s6] sm:$0xff]  }
  0x69   : > { %3050 = vmatprep.subr.mxu0 %v3451_v8  ;;  %v2880_v14 = vld [vmem:[%s4170_s2] ss:$0 sm:$0xff]  ;;  %s4137_s29 = smov 56   ;;  %s4140_s23 = smov 24  }
  0x6a   : > { %s4176_s26 = smov 16   ;;  %s4179_s14 = sld [smem:[#allocation17_spill]] }
  0x70   : > { %p4185_p3 = scmp.ne.s32.totalorder %s4179_s14, 0 }
  0xed   : > { %v580_v2 = vpop.xlane.xlu0 %579 }
  0xee   : > { %v582_v3 = vmul.f32 0.03125, %v580_v2 }
  0xf0   : > { %v583_v4 = vsub.f32 %v3709_v0, %v582_v3 }
  0xf2   : > { %v584_v5 = vmul.f32 %v583_v4, %v583_v4 }
  0xf4   : > { %v585_v6 = vsel %vm577_vm0, %v584_v5, 0.0 }
  0xf5   : > { %586 = vadd.xlane.f32.xlu0 %v585_v6 }
 0x17e   : > { %v587_v10 = vpop.xlane.xlu0 %586 }
 0x17f   : > { %v588_v11 = vmul.f32 0.03125, %v587_v10 }
 0x181   : > { %v589_v12 = vadd.f32 1e-06, %v588_v11 }
 0x183   : > { %3281 = vrsqrt.f32 %v589_v12 }
 0x190   : > { %v3282_v13 = vpop.eup %3281 }
 0x191   : > { %v591_v15 = vmul.f32 %v3282_v13, %v583_v4 }
 0x193   : > { %v598_v17 = vmul.f32 %v2880_v14, %v591_v15 }
 0x195   : > { %v605_v18 = vadd.f32 %v2881_v16, %v598_v17 }
 0x197   : > { %v606_v19 = vpack.c.bf16 %v605_v18, %v605_v18 }
 0x199   : > { %3047 = vmatmul.mubr.msk.bf16.vlgmr.msra.gmra.mxu0 %vm577_vm0, %v606_v19 }
 0x19a   : > { %3052 = vmatprep.mubr.msk.f32.mxu0 %vm3452_vm1, %v3451_v8 }
 0x259   : > { %v667_v21 = vpop.f32.mrf.mxu0 }
 0x25a   : > { %v3741_v22 = vadd.f32 %v2882_v20, %v667_v21 }
 0x25b   : > { %v3048_v23 = vpop.f32.mrf.mxu0 }
 0x25c   : > { %677 = vrot.lane.b32.xlu1 %v3741_v22, %s3453_s30  ;;  %v673_v24 = vmul.f32 0.35355338, %v3741_v22 }
 0x25d   : > { %v670_v25 = vpop.f32.mrf.mxu0 }
 0x25e   : > { %688 = vrot.lane.b32.xlu0 %v673_v24, %s3454_s18  ;;  %675 = vst.msk [vmem:[#allocation2] sm:$0xff] %vm674_vm2, %v673_v24 }
 0x25f   : > { %v3049_v26 = vpop.f32.mrf.mxu0 }
 0x260   : > { %693 = vrot.lane.b32.xlu1 %v3741_v22, %s3455_s28 }
 0x264   : > { %708 = vrot.lane.b32.xlu1 %v3741_v22, %s3456_s15 }
 0x265   : > { %v733_v32 = vld [vmem:[#allocation2] sm:$0xff] }
 0x268   : > { %723 = vrot.lane.b32.xlu1 %v3741_v22, %s3457_s17 }
 0x26c   : > { %703 = vrot.lane.b32.xlu1 %v673_v24, %s3458_s21 }
 0x270   : > { %718 = vrot.lane.b32.xlu1 %v673_v24, %s4144_s19  ;;  %s4181_s19 = sld [smem:[#allocation23_spill]] }
 0x2ce   : > { %v678_v27 = vpop.permute.xlu1 %677 }
 0x2cf   : > { %681 = vst.msk [vmem:[#allocation2 + $0x20] sm:$0xff] %vm674_vm2, %v678_v27 }
 0x2d0   : > { %v689_v28 = vpop.permute.xlu0 %688 }
 0x2d1   : > { %692 = vst.msk [vmem:[#allocation2 + $0x8] sm:$0xff] %vm674_vm2, %v689_v28 }
 0x2d2   : > { %v694_v29 = vpop.permute.xlu1 %693 }
 0x2d3   : > { %697 = vst.msk [vmem:[#allocation2 + $0x28] sm:$0xff] %vm674_vm2, %v694_v29 }
 0x2d6   : > { %v709_v30 = vpop.permute.xlu1 %708  ;;  %v737_v31 = vld [vmem:[#allocation2 + $0x20] sm:$0xff] }
 0x2d7   : > { %712 = vst.msk [vmem:[#allocation2 + $0x30] sm:$0xff] %vm674_vm2, %v709_v30  ;;  %3051 = vmatpush3.xpose.msk.msra.mxu0 %vm674_vm2, %v737_v31 }
 0x2d8   : > { %3065 = vmatprep.subr.mxu0 %v3451_v8  ;;  %v734_v35 = vld [vmem:[#allocation2 + $0x8] sm:$0xff] }
 0x2da   : > { %v724_v33 = vpop.permute.xlu1 %723  ;;  %3053 = vmatmul.mubr.msk.f32.vlgmr.msra.gmra.mxu0 %vm674_vm2, %v733_v32  ;;  %v738_v34 = vld [vmem:[#allocation2 + $0x28] sm:$0xff] }
 0x2db   : > { %727 = vst.msk [vmem:[#allocation2 + $0x38] sm:$0xff] %vm674_vm2, %v724_v33  ;;  %3056 = vmatpush3.xpose.msk.msra.mxu1 %vm674_vm2, %v738_v34  ;;  %3067 = vmatprep.mubr.msk.f32.mxu0 %vm3452_vm1, %v3451_v8 }
 0x2dc   : > { %3060 = vmatprep.subr.mxu1 %v3451_v8 }
 0x2de   : > { %v704_v36 = vpop.permute.xlu1 %703  ;;  %3058 = vmatmul.mubr.msk.f32.vlgmr.msra.gmra.mxu1 %vm674_vm2, %v734_v35  ;;  %v739_v37 = vld [vmem:[#allocation2 + $0x30] sm:$0xff] }
 0x2df   : > { %707 = vst.msk [vmem:[#allocation2 + $0x10] sm:$0xff] %vm674_vm2, %v704_v36  ;;  %3061 = vmatpush3.xpose.msk.msra.mxu1 %vm674_vm2, %v739_v37  ;;  %3062 = vmatprep.mubr.msk.f32.mxu1 %vm3452_vm1, %v3451_v8 }
 0x2e0   : > { %3070 = vmatprep.subr.mxu1 %v3451_v8 }
 0x2e2   : > { %v719_v38 = vpop.permute.xlu1 %718  ;;  %v740_v39 = vld [vmem:[#allocation2 + $0x38] sm:$0xff] }
 0x2e3   : > { %722 = vst.msk [vmem:[#allocation2 + $0x18] sm:$0xff] %vm674_vm2, %v719_v38  ;;  %3066 = vmatpush3.xpose.msk.msra.mxu0 %vm674_vm2, %v740_v39 }
 0x2e4   : > { %3075 = vmatprep.subr.mxu0 %v3451_v8 }
 0x2e6   : > { %v735_v40 = vld [vmem:[#allocation2 + $0x10] sm:$0xff] }
 0x2e7   : > { %3063 = vmatmul.mubr.msk.f32.vlgmr.msra.gmra.mxu1 %vm674_vm2, %v735_v40 }
 0x2e8   : > { %3072 = vmatprep.mubr.msk.f32.mxu1 %vm3452_vm1, %v3451_v8 }
 0x2ea   : > { %v736_v41 = vld [vmem:[#allocation2 + $0x18] sm:$0xff] }
 0x2eb   : > { %3068 = vmatmul.mubr.msk.f32.vlgmr.msra.gmra.mxu0 %vm674_vm2, %v736_v41 }
 0x2ec   : > { %3077 = vmatprep.mubr.msk.f32.mxu0 %vm3452_vm1, %v3451_v8 }
 0x39a   : > { %v823_v48 = vpop.f32.mrf.mxu0 }
 0x39b   : > { %v824_v49 = vadd.f32 %v823_v48, %v3785_v47 }
 0x39c   : > { %v3054_v50 = vpop.f32.mrf.mxu0 }
 0x39d   : > { %v1055_v51 = vsel %vm674_vm2, %v824_v49, -inf }
 0x39e   : > { %v899_v52 = vpop.f32.mrf.mxu1  ;;  %1056 = vmax.xlane.f32.xlu1 %v1055_v51 }
 0x39f   : > { %v900_v53 = vadd.f32 %v899_v52, %v3785_v47 }
 0x3a0   : > { %v3059_v54 = vpop.f32.mrf.mxu1 }
 0x3a1   : > { %v1058_v55 = vsel %vm674_vm2, %v900_v53, -inf }
 0x3a2   : > { %1059 = vmax.xlane.f32.xlu0 %v1058_v55 }
 0x3a7   : > { %v975_v56 = vpop.f32.mrf.mxu1 }
 0x3a8   : > { %v976_v57 = vadd.f32 %v975_v56, %v3785_v47 }
 0x3a9   : > { %v3064_v58 = vpop.f32.mrf.mxu1 }
 0x3aa   : > { %v1061_v59 = vsel %vm674_vm2, %v976_v57, -inf  ;;  %v2898_v58 = vld [vmem:[%s4114_s7] ss:$0 sm:$0xff] }
 0x3ab   : > { %1062 = vmax.xlane.f32.xlu1 %v1061_v59  ;;  %v1051_v60 = vpop.f32.mrf.mxu0 }
 0x3ac   : > { %v1052_v61 = vadd.f32 %v1051_v60, %v3785_v47 }
 0x3ad   : > { %v3069_v62 = vpop.f32.mrf.mxu0 }
 0x3ae   : > { %v1064_v63 = vsel %vm674_vm2, %v1052_v61, -inf }
 0x3af   : > { %1065 = vmax.xlane.f32.xlu0 %v1064_v63 }
 0x3bc   : > { %682 = vrot.lane.b32.xlu1 %v3741_v22, %s4143_s27  ;;  %s2979_s27 = sshll.u32 %s3574_s25, 7 }
 0x427   : > { %v1057_v1 = vpop.xlane.xlu1 %1056 }
 0x428   : > { %v1067_v2 = vsub.f32 %v824_v49, %v1057_v1 }
 0x42a   : > { %v1071_v3 = vmul.f32 1.442695, %v1067_v2 }
 0x42b   : > { %v1060_v4 = vpop.xlane.xlu0 %1059 }
 0x42c   : > { %3283 = vpow2.f32 %v1071_v3  ;;  %v1068_v5 = vsub.f32 %v900_v53, %v1060_v4 }
 0x42e   : > { %v1073_v6 = vmul.f32 1.442695, %v1068_v5 }
 0x430   : > { %3285 = vpow2.f32 %v1073_v6 }
 0x434   : > { %v1063_v7 = vpop.xlane.xlu1 %1062 }
 0x435   : > { %v1069_v9 = vsub.f32 %v976_v57, %v1063_v7 }
 0x437   : > { %v1075_v10 = vmul.f32 1.442695, %v1069_v9  ;;  %v3265_v9 = vld [vmem:[%s4117_s10 + $0x8] sm:$0xff]  }
 0x438   : > { %v683_v11 = vpop.permute.xlu1 %682  ;;  %v1066_v12 = vpop.xlane.xlu0 %1065 }
 0x439   : > { %v3284_v13 = vpop.eup %3283  ;;  %3287 = vpow2.f32 %v1075_v10  ;;  %686 = vst.msk [vmem:[#allocation2 + $0x40] sm:$0xff] %vm674_vm2, %v683_v11  ;;  %v1070_v14 = vsub.f32 %v1052_v61, %v1066_v12  ;;  %v3267_v10 = vld [vmem:[%s4119_s12 + $0x18] sm:$0xff]   ;;  %v3268_v11 = vld [vmem:[%s4119_s12 + $0x10] sm:$0xff]  }
 0x43a   : > { %v1079_v15 = vsel %vm674_vm2, %v3284_v13, 0.0 }
 0x43b   : > { %v1077_v16 = vmul.f32 1.442695, %v1070_v14  ;;  %1080 = vadd.xlane.f32.xlu1 %v1079_v15 }
 0x43d   : > { %v3286_v17 = vpop.eup %3285  ;;  %3289 = vpow2.f32 %v1077_v16  ;;  %v2902_v16 = vld [vmem:[%s4115_s8] ss:$0 sm:$0xff] }
 0x43e   : > { %v1082_v18 = vsel %vm674_vm2, %v3286_v17, 0.0 }
 0x43f   : > { %1083 = vadd.xlane.f32.xlu0 %v1082_v18  ;;  %v2903_v18 = vld [vmem:[%s4116_s9] ss:$0 sm:$0xff] }
 0x440   : > { %v741_v19 = vld [vmem:[#allocation2 + $0x40] sm:$0xff] }
 0x441   : > { %3071 = vmatpush3.msra.mxu1 %v741_v19 }
 0x442   : > { %3080 = vmatprep.subr.mxu1 %v3451_v8 }
 0x446   : > { %v3288_v20 = vpop.eup %3287 }
 0x447   : > { %v1085_v21 = vsel %vm674_vm2, %v3288_v20, 0.0 }
 0x448   : > { %1086 = vadd.xlane.f32.xlu1 %v1085_v21 }
 0x44a   : > { %v3290_v23 = vpop.eup %3289 }
 0x44b   : > { %v1088_v24 = vsel %vm674_vm2, %v3290_v23, 0.0 }
 0x44c   : > { %1089 = vadd.xlane.f32.xlu0 %v1088_v24  ;;  %v3270_v24 = vld [vmem:[%s4119_s12] sm:$0xff]  }
 0x459   : > { %713 = vrot.lane.b32.xlu1 %v3741_v22, %s4139_s0  ;;  %s4141_s0 = smov 8  }
 0x45d   : > { %728 = vrot.lane.b32.xlu1 %v3741_v22, %s4138_s20  ;;  %s4142_s20 = smov 16  }
 0x462   : > { %698 = vrot.lane.b32.xlu0 %v3741_v22, %s4137_s29  ;;  %s2768_s29 = scalar_lea.sflag [#allocation6], %s3693_s16 }
 0x4c4   : > { %v1081_v25 = vpop.xlane.xlu1 %1080 }
 0x4c5   : > { %3291 = vrcp.f32 %v1081_v25  ;;  %v2904_v25 = vld [vmem:[%s4118_s11] ss:$0 sm:$0xff] }
 0x4c8   : > { %v1084_v26 = vpop.xlane.xlu0 %1083 }
 0x4c9   : > { %3293 = vrcp.f32 %v1084_v26 }
 0x4d1   : > { %v1087_v27 = vpop.xlane.xlu1 %1086 }
 0x4d2   : > { %v3292_v28 = vpop.eup %3291  ;;  %3295 = vrcp.f32 %v1087_v27 }
 0x4d3   : > { %v1095_v29 = vmul.f32 %v3292_v28, %v3284_v13 }
 0x4d5   : > { %3073 = vmatmul.mubr.msk.f32.vlgmr.msra.gmra.mxu1 %vm674_vm2, %v1095_v29  ;;  %v714_v30 = vpop.permute.xlu1 %713  ;;  %v1090_v31 = vpop.xlane.xlu0 %1089 }
 0x4d6   : > { %717 = vst.msk [vmem:[#allocation2 + $0x50] sm:$0xff] %vm674_vm2, %v714_v30  ;;  %3297 = vrcp.f32 %v1090_v31  ;;  %3082 = vmatprep.mubr.msk.f32.mxu1 %vm3452_vm1, %v3451_v8  ;;  %v3294_v34 = vpop.eup %3293 }
 0x4d7   : > { %v1096_v38 = vmul.f32 %v3294_v34, %v3286_v17 }
 0x4d9   : > { %v729_v32 = vpop.permute.xlu1 %728  ;;  %v699_v22 = vpop.permute.xlu0 %698 }
 0x4da   : > { %732 = vst.msk [vmem:[#allocation2 + $0x58] sm:$0xff] %vm674_vm2, %v729_v32  ;;  %702 = vst.msk [vmem:[#allocation2 + $0x48] sm:$0xff] %vm674_vm2, %v699_v22 }
 0x4dd   : > { %v743_v33 = vld [vmem:[#allocation2 + $0x50] sm:$0xff] }
 0x4de   : > { %3081 = vmatpush3.msra.mxu1 %v743_v33  ;;  %v2913_v33 = vld [vmem:[%s4120_s13] ss:$0 sm:$0xff] }
 0x4df   : > { %v3296_v35 = vpop.eup %3295  ;;  %3090 = vmatprep.subr.bf16.mxu1 %v3451_v8 }
 0x4e0   : > { %v1097_v36 = vmul.f32 %v3296_v35, %v3288_v20 }
 0x4e1   : > { %v742_v37 = vld [vmem:[#allocation2 + $0x48] sm:$0xff]  ;;  %v744_v40 = vld [vmem:[#allocation2 + $0x58] sm:$0xff] }
 0x4e2   : > { %3076 = vmatpush3.msra.mxu0 %v742_v37  ;;  %3083 = vmatmul.mubr.msk.f32.vlgmr.msra.gmra.mxu1 %vm674_vm2, %v1097_v36 }
 0x4e3   : > { %v3298_v39 = vpop.eup %3297  ;;  %3078 = vmatmul.mubr.msk.f32.vlgmr.msra.gmra.mxu0 %vm674_vm2, %v1096_v38  ;;  %3085 = vmatprep.subr.mxu0 %v3451_v8 }
 0x4e4   : > { %3086 = vmatpush3.msra.mxu0 %v744_v40  ;;  %3087 = vmatprep.mubr.msk.f32.mxu0 %vm3452_vm1, %v3451_v8  ;;  %v1098_v41 = vmul.f32 %v3298_v39, %v3290_v23  ;;  %v3269_v23 = vld [vmem:[%s4119_s12 + $0x8] sm:$0xff]  }
 0x4e5   : > { %3094 = vmatprep.mubr.msk.bf16.mxu1 %vm3452_vm1, %v3451_v8  ;;  %3098 = vmatprep.subr.bf16.mxu0 %v3451_v8 }
 0x4e6   : > { %3091 = vmatpush3.bf16.msra.mxu1 %v3263_v44 }
 0x4e7   : > { %3088 = vmatmul.mubr.msk.f32.vlgmr.msra.gmra.mxu0 %vm674_vm2, %v1098_v41  ;;  %3092 = vmatprep.subr.bf16.mxu1 %v3451_v8 }
 0x4e8   : > { %3102 = vmatprep.mubr.msk.bf16.mxu0 %vm3452_vm1, %v3451_v8  ;;  %3099 = vmatpush3.bf16.msra.mxu0 %v3265_v9 }
 0x4e9   : > { %3100 = vmatprep.subr.bf16.mxu0 %v3451_v8 }
 0x4ea   : > { %3093 = vmatpush3.bf16.msra.mxu1 %v3264_v45  ;;  %v3271_v45 = vld [vmem:[%s4111_s4 + $0x18] sm:$0xff]  }
 0x4eb   : > { %3106 = vmatprep.subr.bf16.mxu1 %v3451_v8 }
 0x595   : > { %v1168_v42 = vpop.f32.mrf.mxu1 }
 0x596   : > { %1391 = vst.msk [vmem:[#allocation3] sm:$0xff] %vm674_vm2, %v1168_v42 }
 0x597   : > { %v3074_v43 = vpop.f32.mrf.mxu1 }
 0x5a2   : > { %v1314_v46 = vpop.f32.mrf.mxu1 }
 0x5a3   : > { %1399 = vrot.lane.b32.xlu1 %v1314_v46, %s4142_s20  ;;  %v1241_v48 = vpop.f32.mrf.mxu0  ;;  %v3272_v46 = vld [vmem:[%s4111_s4 + $0x10] sm:$0xff]   ;;  %s4178_s20 = smov 24  }
 0x5a4   : > { %v3084_v49 = vpop.f32.mrf.mxu1  ;;  %1393 = vrot.lane.b32.xlu0 %v1241_v48, %s4141_s0  ;;  %s4177_s0 = smov 8  }
 0x5a5   : > { %v3079_v50 = vpop.f32.mrf.mxu0 }
 0x5a7   : > { %v1387_v51 = vpop.f32.mrf.mxu0 }
 0x5a8   : > { %1405 = vrot.lane.b32.xlu0 %v1387_v51, %s4140_s23 }
 0x5a9   : > { %v3089_v52 = vpop.f32.mrf.mxu0 }
 0x5aa   : > { %v2916_v52 = vld [vmem:[%s4170_s2 + $0x1] ss:$0 sm:$0xff] }
 0x615   : > { %v1400_v54 = vpop.permute.xlu1 %1399 }
 0x616   : > { %v1394_v53 = vpop.permute.xlu0 %1393 }
 0x617   : > { %1397 = vst.msk [vmem:[#allocation3] sm:$0xff] %vm1396_vm3, %v1394_v53 }
 0x618   : > { %1403 = vst.msk [vmem:[#allocation3] sm:$0xff] %vm1402_vm4, %v1400_v54  ;;  %v2917_v54 = vld [vmem:[%s4110_s3 + $0x1] ss:$0 sm:$0xff] }
 0x61a   : > { %v1406_v55 = vpop.permute.xlu0 %1405 }
 0x61b   : > { %1409 = vst.msk [vmem:[#allocation3] sm:$0xff] %vm1408_vm5, %v1406_v55 }
 0x622   : > { %v1410_v56 = vld [vmem:[#allocation3] sm:$0xff] }
 0x623   : > { %v1411_v57 = vpack.c.bf16 %v1410_v56, %v1410_v56 }
 0x625   : > { %3095 = vmatmul.mubr.msk.bf16.vlgmr.msra.gmra.mxu1 %vm577_vm0, %v1411_v57 }
 0x626   : > { %3114 = vmatprep.mubr.msk.bf16.mxu1 %vm3452_vm1, %v3451_v8  ;;  %3107 = vmatpush3.bf16.msra.mxu1 %v3267_v10 }
 0x627   : > { %3108 = vmatprep.subr.bf16.mxu1 %v3451_v8 }
 0x62a   : > { %3109 = vmatpush3.bf16.msra.mxu1 %v3268_v11 }
 0x62b   : > { %3110 = vmatprep.subr.bf16.mxu1 %v3451_v8 }
 0x62e   : > { %3111 = vmatpush3.bf16.msra.mxu1 %v3269_v23 }
 0x62f   : > { %3112 = vmatprep.subr.bf16.mxu1 %v3451_v8 }
 0x632   : > { %3113 = vmatpush3.bf16.msra.mxu1 %v3270_v24 }
 0x633   : > { %3136 = vmatprep.subr.mxu1 %v3451_v8 }
 0x6e5   : > { %v1472_v59 = vpop.f32.mrf.mxu1 }
 0x6e6   : > { %v1473_v60 = vadd.f32 %v2898_v58, %v1472_v59  ;;  %v2923_v58 = vld [vmem:[%s4112_s5 + $0x1] ss:$0 sm:$0xff] }
 0x6e7   : > { %v3096_v61 = vpop.f32.mrf.mxu1 }
 0x6e8   : > { %v1478_v62 = vadd.f32 %v1473_v60, %v3709_v0  ;;  %v3266_v0 = vld [vmem:[%s4117_s10] sm:$0xff]  }
 0x6e9   : > { %v1475_v63 = vpop.f32.mrf.mxu1  ;;  %3101 = vmatpush3.bf16.msra.mxu0 %v3266_v0 }
 0x6ea   : > { %v1481_v1 = vsel %vm577_vm0, %v1478_v62, 0.0  ;;  %3118 = vmatprep.subr.bf16.mxu0 %v3451_v8 }
 0x6eb   : > { %1482 = vadd.xlane.f32.xlu1 %v1481_v1  ;;  %v3097_v2 = vpop.f32.mrf.mxu1 }
 0x774   : > { %v1483_v3 = vpop.xlane.xlu1 %1482 }
 0x775   : > { %v1484_v4 = vmul.f32 0.03125, %v1483_v3 }
 0x777   : > { %v1485_v5 = vsub.f32 %v1478_v62, %v1484_v4 }
 0x779   : > { %v1486_v6 = vmul.f32 %v1485_v5, %v1485_v5 }
 0x77b   : > { %v1487_v7 = vsel %vm577_vm0, %v1486_v6, 0.0 }
 0x77c   : > { %1488 = vadd.xlane.f32.xlu0 %v1487_v7 }
 0x805   : > { %v1489_v12 = vpop.xlane.xlu0 %1488 }
 0x806   : > { %v1490_v13 = vmul.f32 0.03125, %v1489_v12 }
 0x808   : > { %v1491_v14 = vadd.f32 1e-06, %v1490_v13 }
 0x80a   : > { %3299 = vrsqrt.f32 %v1491_v14 }
 0x817   : > { %v3300_v15 = vpop.eup %3299 }
 0x818   : > { %v1493_v17 = vmul.f32 %v3300_v15, %v1485_v5 }
 0x81a   : > { %v1500_v19 = vmul.f32 %v2902_v16, %v1493_v17 }
 0x81c   : > { %v1507_v20 = vadd.f32 %v2903_v18, %v1500_v19 }
 0x81e   : > { %v1508_v21 = vpack.c.bf16 %v1507_v20, %v1507_v20 }
 0x820   : > { %3103 = vmatmul.mubr.msk.bf16.vlgmr.msra.gmra.mxu0 %vm577_vm0, %v1508_v21 }
 0x821   : > { %3122 = vmatprep.mubr.msk.bf16.mxu0 %vm3452_vm1, %v3451_v8  ;;  %3119 = vmatpush3.bf16.msra.mxu0 %v3271_v45 }
 0x822   : > { %3120 = vmatprep.subr.bf16.mxu0 %v3451_v8 }
 0x825   : > { %3121 = vmatpush3.bf16.msra.mxu0 %v3272_v46 }
 0x826   : > { %3126 = vmatprep.subr.mxu0 %v3451_v8 }
 0x8e0   : > { %v1569_v26 = vpop.f32.mrf.mxu0 }
 0x8e1   : > { %v1570_v27 = vadd.f32 %v2904_v25, %v1569_v26 }
 0x8e2   : > { %v3104_v28 = vpop.f32.mrf.mxu0 }
 0x8e3   : > { %v1575_v29 = vmax.f32 %v1570_v27, 0.0 }
 0x8e4   : > { %v1572_v30 = vpop.f32.mrf.mxu0 }
 0x8e5   : > { %v1576_v31 = vpack.c.bf16 %v1575_v29, %v1575_v29 }
 0x8e6   : > { %v3105_v32 = vpop.f32.mrf.mxu0 }
 0x8e7   : > { %3115 = vmatmul.mubr.msk.bf16.vlgmr.msra.gmra.mxu1 %vm1609_vm6, %v1576_v31 }
 0x8e8   : > { %3138 = vmatprep.mubr.msk.f32.mxu1 %vm3452_vm1, %v3451_v8 }
 0x9a7   : > { %v1647_v22 = vpop.f32.mrf.mxu1 }
 0x9a8   : > { %v1653_v34 = vadd.f32 %v1647_v22, %v1478_v62 }
 0x9a9   : > { %v3116_v35 = vpop.f32.mrf.mxu1 }
 0x9aa   : > { %v3893_v36 = vadd.f32 %v2913_v33, %v1653_v34 }
 0x9ab   : > { %v1650_v37 = vpop.f32.mrf.mxu1 }
 0x9ac   : > { %v1666_v38 = vsel %vm577_vm0, %v3893_v36, 0.0 }
 0x9ad   : > { %1667 = vadd.xlane.f32.xlu0 %v1666_v38  ;;  %v3117_v39 = vpop.f32.mrf.mxu1 }
 0xa36   : > { %v1668_v40 = vpop.xlane.xlu0 %1667 }
 0xa37   : > { %v1669_v41 = vmul.f32 0.03125, %v1668_v40 }
 0xa39   : > { %v1670_v42 = vsub.f32 %v3893_v36, %v1669_v41 }
 0xa3b   : > { %v1671_v43 = vmul.f32 %v1670_v42, %v1670_v42 }
 0xa3d   : > { %v1672_v44 = vsel %vm577_vm0, %v1671_v43, 0.0 }
 0xa3e   : > { %1673 = vadd.xlane.f32.xlu1 %v1672_v44 }
 0xac7   : > { %v1674_v48 = vpop.xlane.xlu1 %1673 }
 0xac8   : > { %v1675_v49 = vmul.f32 0.03125, %v1674_v48 }
 0xaca   : > { %v1676_v50 = vadd.f32 1e-06, %v1675_v49 }
 0xacc   : > { %3301 = vrsqrt.f32 %v1676_v50 }
 0xad9   : > { %v3302_v51 = vpop.eup %3301 }
 0xada   : > { %v1678_v53 = vmul.f32 %v3302_v51, %v1670_v42 }
 0xadc   : > { %v1685_v55 = vmul.f32 %v2916_v52, %v1678_v53 }
 0xade   : > { %v1692_v56 = vadd.f32 %v2917_v54, %v1685_v55 }
 0xae0   : > { %v1693_v57 = vpack.c.bf16 %v1692_v56, %v1692_v56 }
 0xae2   : > { %3123 = vmatmul.mubr.msk.bf16.vlgmr.msra.gmra.mxu0 %vm577_vm0, %v1693_v57 }
 0xae3   : > { %3128 = vmatprep.mubr.msk.f32.mxu0 %vm3452_vm1, %v3451_v8 }
 0xba2   : > { %v1756_v59 = vpop.f32.mrf.mxu0 }
 0xba3   : > { %v3919_v60 = vadd.f32 %v2923_v58, %v1756_v59 }
 0xba4   : > { %v3124_v61 = vpop.f32.mrf.mxu0 }
 0xba5   : > { %1778 = vrot.lane.b32.xlu1 %v3919_v60, %s3455_s28  ;;  %1765 = vrot.lane.b32.xlu0 %v3919_v60, %s3453_s30  ;;  %v1762_v62 = vmul.f32 0.35355338, %v3919_v60  ;;  %s4171_s28 = smov 104   ;;  %s4172_s30 = smov 64  }
 0xba6   : > { %v1759_v63 = vpop.f32.mrf.mxu0 }
 0xba7   : > { %1763 = vst.msk [vmem:[#allocation2] sm:$0xff] %vm674_vm2, %v1762_v62 }
 0xba8   : > { %v3125_v1 = vpop.f32.mrf.mxu0 }
 0xba9   : > { %1802 = vrot.lane.b32.xlu1 %v3919_v60, %s3457_s17  ;;  %1790 = vrot.lane.b32.xlu0 %v3919_v60, %s3456_s15  ;;  %s4174_s15 = smov 40   ;;  %s4175_s17 = smov 56  }
 0xbad   : > { %1786 = vrot.lane.b32.xlu0 %v1762_v62, %s3458_s21  ;;  %1774 = vrot.lane.b32.xlu1 %v1762_v62, %s3454_s18  ;;  %s4173_s18 = smov 48   ;;  %s4183_s21 = sld [smem:[#allocation24_spill]] }
 0xbae   : > { %v1810_v0 = vld [vmem:[#allocation2] sm:$0xff] }
 0xbb1   : > { %1798 = vrot.lane.b32.xlu1 %v1762_v62, %s4171_s28  ;;  %s4182_s28 = sshll.u32 %s3693_s16, 3 }
 0xbb3   : > { %s4184_s1 = smov %s4183_s21  ;;  %s2779_s2 = scalar_lea.hbm %s4183_s21, %s2979_s27 }
 0xc17   : > { %v1779_v2 = vpop.permute.xlu1 %1778  ;;  %v1766_v3 = vpop.permute.xlu0 %1765 }
 0xc18   : > { %1781 = vst.msk [vmem:[#allocation2 + $0x28] sm:$0xff] %vm674_vm2, %v1779_v2  ;;  %1768 = vst.msk [vmem:[#allocation2 + $0x20] sm:$0xff] %vm674_vm2, %v1766_v3 }
 0xc1b   : > { %v1803_v4 = vpop.permute.xlu1 %1802  ;;  %v1791_v5 = vpop.permute.xlu0 %1790 }
 0xc1c   : > { %1805 = vst.msk [vmem:[#allocation2 + $0x38] sm:$0xff] %vm674_vm2, %v1803_v4  ;;  %1793 = vst.msk [vmem:[#allocation2 + $0x30] sm:$0xff] %vm674_vm2, %v1791_v5 }
 0xc1f   : > { %v1787_v6 = vpop.permute.xlu0 %1786  ;;  %v1775_v7 = vpop.permute.xlu1 %1774  ;;  %v1814_v9 = vld [vmem:[#allocation2 + $0x20] sm:$0xff]  ;;  %v1815_v11 = vld [vmem:[#allocation2 + $0x28] sm:$0xff] }
 0xc20   : > { %1789 = vst.msk [vmem:[#allocation2 + $0x10] sm:$0xff] %vm674_vm2, %v1787_v6  ;;  %1777 = vst.msk [vmem:[#allocation2 + $0x8] sm:$0xff] %vm674_vm2, %v1775_v7  ;;  %3127 = vmatpush3.xpose.msk.msra.mxu0 %vm674_vm2, %v1814_v9 }
 0xc21   : > { %3131 = vmatprep.subr.mxu0 %v3451_v8 }
 0xc23   : > { %v1799_v10 = vpop.permute.xlu1 %1798  ;;  %3129 = vmatmul.mubr.msk.f32.vlgmr.msra.gmra.mxu0 %vm674_vm2, %v1810_v0  ;;  %v1816_v12 = vld [vmem:[#allocation2 + $0x30] sm:$0xff]  ;;  %v1817_v15 = vld [vmem:[#allocation2 + $0x38] sm:$0xff] }
 0xc24   : > { %1801 = vst.msk [vmem:[#allocation2 + $0x18] sm:$0xff] %vm674_vm2, %v1799_v10  ;;  %3132 = vmatpush3.xpose.msk.msra.mxu0 %vm674_vm2, %v1815_v11  ;;  %3137 = vmatpush3.xpose.msk.msra.mxu1 %vm674_vm2, %v1816_v12  ;;  %v3273_v11 = vld [vmem:[%s4113_s6 + $0x18] sm:$0xff]  }
 0xc25   : > { %3133 = vmatprep.mubr.msk.f32.mxu0 %vm3452_vm1, %v3451_v8  ;;  %3141 = vmatprep.subr.mxu0 %v3451_v8 }
 0xc26   : > { %3146 = vmatprep.subr.mxu1 %v3451_v8 }
 0xc27   : > { %v1811_v13 = vld [vmem:[#allocation2 + $0x8] sm:$0xff]  ;;  %v1812_v14 = vld [vmem:[#allocation2 + $0x10] sm:$0xff] }
 0xc28   : > { %3134 = vmatmul.mubr.msk.f32.vlgmr.msra.gmra.mxu0 %vm674_vm2, %v1811_v13  ;;  %3139 = vmatmul.mubr.msk.f32.vlgmr.msra.gmra.mxu1 %vm674_vm2, %v1812_v14  ;;  %v3274_v13 = vld [vmem:[%s4113_s6 + $0x10] sm:$0xff]  }
 0xc29   : > { %3142 = vmatpush3.xpose.msk.msra.mxu0 %vm674_vm2, %v1817_v15  ;;  %3143 = vmatprep.mubr.msk.f32.mxu0 %vm3452_vm1, %v3451_v8 }
 0xc2a   : > { %3148 = vmatprep.mubr.msk.f32.mxu1 %vm3452_vm1, %v3451_v8  ;;  %3151 = vmatprep.subr.mxu0 %v3451_v8 }
 0xc2b   : > { %v1813_v16 = vld [vmem:[#allocation2 + $0x18] sm:$0xff] }
 0xc2c   : > { %3144 = vmatmul.mubr.msk.f32.vlgmr.msra.gmra.mxu0 %vm674_vm2, %v1813_v16 }
 0xc2d   : > { %3153 = vmatprep.mubr.msk.f32.mxu0 %vm3452_vm1, %v3451_v8 }
 0xce3   : > { %v1894_v17 = vpop.f32.mrf.mxu0 }
 0xce4   : > { %v1895_v18 = vadd.f32 %v1894_v17, %v3785_v47 }
 0xce5   : > { %v3130_v19 = vpop.f32.mrf.mxu0 }
 0xce6   : > { %v2126_v20 = vsel %vm674_vm2, %v1895_v18, -inf }
 0xce7   : > { %2127 = vmax.xlane.f32.xlu0 %v2126_v20 }
 0xce8   : > { %v1970_v21 = vpop.f32.mrf.mxu0  ;;  %v2046_v23 = vpop.f32.mrf.mxu1 }
 0xce9   : > { %v1971_v24 = vadd.f32 %v1970_v21, %v3785_v47  ;;  %v2047_v25 = vadd.f32 %v2046_v23, %v3785_v47 }
 0xcea   : > { %v3135_v26 = vpop.f32.mrf.mxu0  ;;  %v3140_v27 = vpop.f32.mrf.mxu1 }
 0xceb   : > { %v2132_v28 = vsel %vm674_vm2, %v2047_v25, -inf  ;;  %v2129_v29 = vsel %vm674_vm2, %v1971_v24, -inf  ;;  %v2944_v27 = vld [vmem:[%s4114_s7 + $0x1] ss:$0 sm:$0xff] }
 0xcec   : > { %2133 = vmax.xlane.f32.xlu0 %v2132_v28  ;;  %2130 = vmax.xlane.f32.xlu1 %v2129_v29  ;;  %v2122_v30 = vpop.f32.mrf.mxu0 }
 0xced   : > { %v2123_v31 = vadd.f32 %v2122_v30, %v3785_v47 }
 0xcee   : > { %v3145_v32 = vpop.f32.mrf.mxu0 }
 0xcef   : > { %v2135_v22 = vsel %vm674_vm2, %v2123_v31, -inf }
 0xcf0   : > { %2136 = vmax.xlane.f32.xlu0 %v2135_v22 }
 0xcfd   : > { %1769 = vrot.lane.b32.xlu1 %v3919_v60, %s4172_s30  ;;  %s570_s30 = scalar_lea.vmem [#allocation9], %s4182_s28 }
 0xd70   : > { %v2128_v33 = vpop.xlane.xlu0 %2127 }
 0xd71   : > { %v2138_v34 = vsub.f32 %v1895_v18, %v2128_v33 }
 0xd73   : > { %v2142_v35 = vmul.f32 1.442695, %v2138_v34 }
 0xd75   : > { %3303 = vpow2.f32 %v2142_v35  ;;  %v2134_v37 = vpop.xlane.xlu0 %2133  ;;  %v2131_v38 = vpop.xlane.xlu1 %2130 }
 0xd76   : > { %v2140_v39 = vsub.f32 %v2047_v25, %v2134_v37  ;;  %v2139_v40 = vsub.f32 %v1971_v24, %v2131_v38 }
 0xd78   : > { %v2146_v41 = vmul.f32 1.442695, %v2140_v39  ;;  %v2144_v42 = vmul.f32 1.442695, %v2139_v40  ;;  %v3275_v40 = vld [vmem:[%s4117_s10 + $0x18] sm:$0xff]  }
 0xd79   : > { %v1770_v43 = vpop.permute.xlu1 %1769  ;;  %v2137_v44 = vpop.xlane.xlu0 %2136 }
 0xd7a   : > { %3305 = vpow2.f32 %v2146_v41  ;;  %1772 = vst.msk [vmem:[#allocation2 + $0x40] sm:$0xff] %vm674_vm2, %v1770_v43  ;;  %v2141_v47 = vsub.f32 %v2123_v31, %v2137_v44  ;;  %v3277_v41 = vld [vmem:[%s4119_s12 + $0x38] sm:$0xff]  }
 0xd7b   : > { %3307 = vpow2.f32 %v2144_v42  ;;  %v3278_v42 = vld [vmem:[%s4119_s12 + $0x30] sm:$0xff]  }
 0xd7c   : > { %v2148_v45 = vmul.f32 1.442695, %v2141_v47 }
 0xd7e   : > { %3309 = vpow2.f32 %v2148_v45 }
 0xd81   : > { %v1818_v46 = vld [vmem:[#allocation2 + $0x40] sm:$0xff] }
 0xd82   : > { %v3304_v48 = vpop.eup %3303  ;;  %3147 = vmatpush3.msra.mxu1 %v1818_v46  ;;  %v2950_v46 = vld [vmem:[%s4115_s8 + $0x1] ss:$0 sm:$0xff] }
 0xd83   : > { %v2150_v49 = vsel %vm674_vm2, %v3304_v48, 0.0  ;;  %3156 = vmatprep.subr.mxu1 %v3451_v8 }
 0xd84   : > { %2151 = vadd.xlane.f32.xlu1 %v2150_v49  ;;  %v2951_v49 = vld [vmem:[%s4116_s9 + $0x1] ss:$0 sm:$0xff] }
 0xd87   : > { %v3306_v50 = vpop.eup %3305 }
 0xd88   : > { %v3308_v51 = vpop.eup %3307  ;;  %v2156_v52 = vsel %vm674_vm2, %v3306_v50, 0.0 }
 0xd89   : > { %2157 = vadd.xlane.f32.xlu1 %v2156_v52  ;;  %v2153_v53 = vsel %vm674_vm2, %v3308_v51, 0.0 }
 0xd8a   : > { %2154 = vadd.xlane.f32.xlu0 %v2153_v53  ;;  %v3279_v53 = vld [vmem:[%s4119_s12 + $0x28] sm:$0xff]  }
 0xd8b   : > { %v3310_v54 = vpop.eup %3309 }
 0xd8c   : > { %v2159_v55 = vsel %vm674_vm2, %v3310_v54, 0.0 }
 0xd8e   : > { %2160 = vadd.xlane.f32.xlu0 %v2159_v55  ;;  %v2957_v55 = vld [vmem:[%s4118_s11 + $0x1] ss:$0 sm:$0xff] }
 0xd9a   : > { %1794 = vrot.lane.b32.xlu1 %v3919_v60, %s4173_s18  ;;  %s2781_s18 = sshll.u32 %s570_s30, 4  ;;  %s2782_s18 = int_to_ptr.vmem [resolvable:$true] %s2781_s18 }
 0xd9b   : > { %s3379_s23 = scalar_lea.vmem %s2782_s18, 128 }
 0xd9c   : > { %p3380_p13 = scmp.ne.s32.totalorder %s2782_s18, %s3379_s23 }
 0xd9e   : > { %1806 = vrot.lane.b32.xlu1 %v3919_v60, %s4174_s15  ;;  %p3381_p7 = pnand %p3380_p13, %p4185_p3 }
 0xda0   : > { %p3382_p8 = pneg %p3381_p7 }
 0xda4   : > { %1782 = vrot.lane.b32.xlu0 %v3919_v60, %s4175_s17 }
 0xe0d   : > { %v2152_v56 = vpop.xlane.xlu1 %2151 }
 0xe0e   : > { %3311 = vrcp.f32 %v2152_v56 }
 0xe12   : > { %v2158_v57 = vpop.xlane.xlu1 %2157 }
 0xe13   : > { %3313 = vrcp.f32 %v2158_v57  ;;  %v2155_v58 = vpop.xlane.xlu0 %2154 }
 0xe14   : > { %3315 = vrcp.f32 %v2155_v58 }
 0xe16   : > { %v1795_v59 = vpop.permute.xlu1 %1794 }
 0xe17   : > { %1797 = vst.msk [vmem:[#allocation2 + $0x50] sm:$0xff] %vm674_vm2, %v1795_v59  ;;  %v2161_v61 = vpop.xlane.xlu0 %2160 }
 0xe18   : > { %3317 = vrcp.f32 %v2161_v61 }
 0xe1a   : > { %v1807_v62 = vpop.permute.xlu1 %1806 }
 0xe1b   : > { %v3312_v63 = vpop.eup %3311  ;;  %1809 = vst.msk [vmem:[#allocation2 + $0x58] sm:$0xff] %vm674_vm2, %v1807_v62  ;;  %v1783_v1 = vpop.permute.xlu0 %1782 }
 0xe1c   : > { %1785 = vst.msk [vmem:[#allocation2 + $0x48] sm:$0xff] %vm674_vm2, %v1783_v1  ;;  %v2166_v2 = vmul.f32 %v3312_v63, %v3304_v48 }
 0xe1e   : > { %3149 = vmatmul.mubr.msk.f32.vlgmr.msra.gmra.mxu1 %vm674_vm2, %v2166_v2  ;;  %v1820_v60 = vld [vmem:[#allocation2 + $0x50] sm:$0xff] }
 0xe1f   : > { %3157 = vmatpush3.msra.mxu1 %v1820_v60  ;;  %3158 = vmatprep.mubr.msk.f32.mxu1 %vm3452_vm1, %v3451_v8 }
 0xe20   : > { %v3314_v3 = vpop.eup %3313  ;;  %3166 = vmatprep.subr.bf16.mxu1 %v3451_v8 }
 0xe21   : > { %v3316_v4 = vpop.eup %3315  ;;  %v2168_v5 = vmul.f32 %v3314_v3, %v3306_v50 }
 0xe22   : > { %v2167_v6 = vmul.f32 %v3316_v4, %v3308_v51  ;;  %v1821_v0 = vld [vmem:[#allocation2 + $0x58] sm:$0xff] }
 0xe23   : > { %v1819_v7 = vld [vmem:[#allocation2 + $0x48] sm:$0xff]  ;;  %3159 = vmatmul.mubr.msk.f32.vlgmr.msra.gmra.mxu1 %vm674_vm2, %v2168_v5 }
 0xe24   : > { %3152 = vmatpush3.msra.mxu0 %v1819_v7  ;;  %3170 = vmatprep.mubr.msk.bf16.mxu1 %vm3452_vm1, %v3451_v8 }
 0xe25   : > { %v3318_v9 = vpop.eup %3317  ;;  %3154 = vmatmul.mubr.msk.f32.vlgmr.msra.gmra.mxu0 %vm674_vm2, %v2167_v6  ;;  %3161 = vmatprep.subr.mxu0 %v3451_v8 }
 0xe26   : > { %3162 = vmatpush3.msra.mxu0 %v1821_v0  ;;  %3163 = vmatprep.mubr.msk.f32.mxu0 %vm3452_vm1, %v3451_v8  ;;  %v2169_v10 = vmul.f32 %v3318_v9, %v3310_v54  ;;  %v3280_v54 = vld [vmem:[%s4119_s12 + $0x20] sm:$0xff]  }
 0xe27   : > { %3174 = vmatprep.subr.bf16.mxu0 %v3451_v8  ;;  %3167 = vmatpush3.bf16.msra.mxu1 %v3273_v11 }
 0xe28   : > { %3168 = vmatprep.subr.bf16.mxu1 %v3451_v8 }
 0xe29   : > { %3164 = vmatmul.mubr.msk.f32.vlgmr.msra.gmra.mxu0 %vm674_vm2, %v2169_v10 }
 0xe2a   : > { %3178 = vmatprep.mubr.msk.bf16.mxu0 %vm3452_vm1, %v3451_v8  ;;  %3175 = vmatpush3.bf16.msra.mxu0 %v3275_v40 }
 0xe2b   : > { %3169 = vmatpush3.bf16.msra.mxu1 %v3274_v13  ;;  %3176 = vmatprep.subr.bf16.mxu0 %v3451_v8 }
 0xe2c   : > { %3182 = vmatprep.subr.bf16.mxu1 %v3451_v8 }
 0xede   : > { %v2239_v12 = vpop.f32.mrf.mxu1 }
 0xedf   : > { %2462 = vst.msk [vmem:[#allocation3] sm:$0xff] %vm674_vm2, %v2239_v12 }
 0xee0   : > { %v3150_v14 = vpop.f32.mrf.mxu1 }
 0xee3   : > { %v2385_v15 = vpop.f32.mrf.mxu1 }
 0xee4   : > { %2469 = vrot.lane.b32.xlu1 %v2385_v15, %s4176_s26  ;;  %s4180_s26 = sld [smem:[#allocation22_spill]] }
 0xee5   : > { %v2312_v16 = vpop.f32.mrf.mxu0  ;;  %v3160_v17 = vpop.f32.mrf.mxu1 }
 0xee6   : > { %2464 = vrot.lane.b32.xlu0 %v2312_v16, %s4177_s0 }
 0xee7   : > { %v3155_v18 = vpop.f32.mrf.mxu0 }
 0xee8   : > { %v2977_v18 = vld [vmem:[%s4181_s19] ss:$0 sm:$0xff] }
 0xee9   : > { %v2458_v19 = vpop.f32.mrf.mxu0 }
 0xeea   : > { %2474 = vrot.lane.b32.xlu0 %v2458_v19, %s4178_s20  ;;  %v2976_v16 = vld [vmem:[%s4180_s26] ss:$0 sm:$0xff]  ;;  %s3467_s26 = smov [#allocation9]  }
 0xeeb   : > { %v3165_v20 = vpop.f32.mrf.mxu0  ;;  %s3383_s25 = sshll.u32 %s3467_s26, 4  ;;  %s3384_s25 = int_to_ptr.vmem [resolvable:$false] %s3383_s25 }
 0xeec   : > { %s3385_s0 = scalar_lea.vmem %s3384_s25, 256  ;;  %p3386_p10 = scmp.lt.s32.totalorder %s2782_s18, %s3384_s25 }
 0xeed   : > { %p3387_p2 = scmp.lt.s32.totalorder %s3385_s0, %s3379_s23 }
 0xeef   : > { %p3388_p4 = por %p3387_p2, %p3386_p10 }
 0xef1   : > { %p3389_p5 = pnand %p3388_p4, %p3382_p8 }
 0xf56   : > { %v2470_v23 = vpop.permute.xlu1 %2469 }
 0xf58   : > { %v2465_v21 = vpop.permute.xlu0 %2464 }
 0xf59   : > { %2467 = vst.msk [vmem:[#allocation3] sm:$0xff] %vm1396_vm3, %v2465_v21 }
 0xf5a   : > { %2472 = vst.msk [vmem:[#allocation3] sm:$0xff] %vm1402_vm4, %v2470_v23 }
 0xf5c   : > { %v2475_v24 = vpop.permute.xlu0 %2474 }
 0xf5d   : > { %2477 = vst.msk [vmem:[#allocation3] sm:$0xff] %vm1408_vm5, %v2475_v24 }
 0xf64   : > { %v2478_v25 = vld [vmem:[#allocation3] sm:$0xff] }
 0xf65   : > { %v2479_v26 = vpack.c.bf16 %v2478_v25, %v2478_v25 }
 0xf67   : > { %3171 = vmatmul.mubr.msk.bf16.vlgmr.msra.gmra.mxu1 %vm577_vm0, %v2479_v26 }
 0xf68   : > { %3190 = vmatprep.mubr.msk.bf16.mxu1 %vm3452_vm1, %v3451_v8  ;;  %3183 = vmatpush3.bf16.msra.mxu1 %v3277_v41 }
 0xf69   : > { %3184 = vmatprep.subr.bf16.mxu1 %v3451_v8 }
 0xf6c   : > { %3185 = vmatpush3.bf16.msra.mxu1 %v3278_v42 }
 0xf6d   : > { %3186 = vmatprep.subr.bf16.mxu1 %v3451_v8 }
 0xf70   : > { %3187 = vmatpush3.bf16.msra.mxu1 %v3279_v53 }
 0xf71   : > { %3188 = vmatprep.subr.bf16.mxu1 %v3451_v8  ;;  %v2975_v8 = vld [vmem:[%s4120_s13 + $0x1] ss:$0 sm:$0xff] }
 0xf74   : > { %3189 = vmatpush3.bf16.msra.mxu1 %v3280_v54 }
0x1027   : > { %v2542_v28 = vpop.f32.mrf.mxu1 }
0x1028   : > { %v2543_v29 = vadd.f32 %v2944_v27, %v2542_v28 }
0x1029   : > { %v3172_v30 = vpop.f32.mrf.mxu1 }
0x102a   : > { %v2548_v31 = vadd.f32 %v2543_v29, %v3893_v36  ;;  %v3276_v36 = vld [vmem:[%s4117_s10 + $0x10] sm:$0xff]  }
0x102b   : > { %v2545_v32 = vpop.f32.mrf.mxu1  ;;  %3177 = vmatpush3.bf16.msra.mxu0 %v3276_v36 }
0x102c   : > { %v2553_v22 = vsel %vm577_vm0, %v2548_v31, 0.0 }
0x102d   : > { %2554 = vadd.xlane.f32.xlu1 %v2553_v22  ;;  %v3173_v33 = vpop.f32.mrf.mxu1 }
0x10b6   : > { %v2555_v34 = vpop.xlane.xlu1 %2554 }
0x10b7   : > { %v2556_v35 = vmul.f32 0.03125, %v2555_v34 }
0x10b9   : > { %v2557_v37 = vsub.f32 %v2548_v31, %v2556_v35 }
0x10bb   : > { %v2558_v38 = vmul.f32 %v2557_v37, %v2557_v37 }
0x10bd   : > { %v2559_v39 = vsel %vm577_vm0, %v2558_v38, 0.0 }
0x10be   : > { %2560 = vadd.xlane.f32.xlu0 %v2559_v39 }
0x1147   : > { %v2561_v43 = vpop.xlane.xlu0 %2560 }
0x1148   : > { %v2562_v44 = vmul.f32 0.03125, %v2561_v43 }
0x114a   : > { %v2563_v47 = vadd.f32 1e-06, %v2562_v44 }
0x114c   : > { %3319 = vrsqrt.f32 %v2563_v47 }
0x1159   : > { %v3320_v45 = vpop.eup %3319 }
0x115a   : > { %v2565_v48 = vmul.f32 %v3320_v45, %v2557_v37 }
0x115c   : > { %v2572_v50 = vmul.f32 %v2950_v46, %v2565_v48 }
0x115e   : > { %v2579_v51 = vadd.f32 %v2951_v49, %v2572_v50 }
0x1160   : > { %v2580_v52 = vpack.c.bf16 %v2579_v51, %v2579_v51 }
0x1162   : > { %3179 = vmatmul.mubr.msk.bf16.vlgmr.msra.gmra.mxu0 %vm577_vm0, %v2580_v52 }
0x1222   : > { %v2643_v56 = vpop.f32.mrf.mxu0 }
0x1223   : > { %v2644_v57 = vadd.f32 %v2957_v55, %v2643_v56 }
0x1224   : > { %v3180_v58 = vpop.f32.mrf.mxu0 }
0x1225   : > { %v2649_v59 = vmax.f32 %v2644_v57, 0.0 }
0x1226   : > { %v2646_v61 = vpop.f32.mrf.mxu0 }
0x1227   : > { %v2650_v62 = vpack.c.bf16 %v2649_v59, %v2649_v59 }
0x1228   : > { %v3181_v63 = vpop.f32.mrf.mxu0 }
0x1229   : > { %3191 = vmatmul.mubr.msk.bf16.vlgmr.msra.gmra.mxu1 %vm1609_vm6, %v2650_v62 }
0x12e9   : > { %v2721_v1 = vpop.f32.mrf.mxu1 }
0x12ea   : > { %v2727_v2 = vadd.f32 %v2721_v1, %v2548_v31 }
0x12eb   : > { %v3192_v60 = vpop.f32.mrf.mxu1 }
0x12ec   : > { %v2736_v3 = vadd.f32 %v2975_v8, %v2727_v2 }
0x12ed   : > { %v2724_v4 = vpop.f32.mrf.mxu1 }
0x12ee   : > { %v2739_v5 = vsel %vm577_vm0, %v2736_v3, 0.0 }
0x12ef   : > { %2740 = vadd.xlane.f32.xlu0 %v2739_v5  ;;  %v3193_v6 = vpop.f32.mrf.mxu1 }
0x1378   : > { %v2741_v7 = vpop.xlane.xlu0 %2740 }
0x1379   : > { %v2742_v9 = vmul.f32 0.03125, %v2741_v7 }
0x137b   : > { %v2743_v0 = vsub.f32 %v2736_v3, %v2742_v9 }
0x137d   : > { %v2744_v10 = vmul.f32 %v2743_v0, %v2743_v0 }
0x137f   : > { %v2745_v11 = vsel %vm577_vm0, %v2744_v10, 0.0 }
0x1380   : > { %2746 = vadd.xlane.f32.xlu1 %v2745_v11 }
0x1409   : > { %v2747_v12 = vpop.xlane.xlu1 %2746 }
0x140a   : > { %v2748_v13 = vmul.f32 0.03125, %v2747_v12 }
0x140c   : > { %v2749_v14 = vadd.f32 1e-06, %v2748_v13 }
0x140e   : > { %3321 = vrsqrt.f32 %v2749_v14 }
0x141b   : > { %v3322_v15 = vpop.eup %3321 }
0x141c   : > { %v2751_v17 = vmul.f32 %v3322_v15, %v2743_v0 }
0x141e   : > { %v2758_v19 = vmul.f32 %v2976_v16, %v2751_v17 }
0x1420   : > { %v2765_v20 = vadd.f32 %v2977_v18, %v2758_v19 }
0x1422   : > { %2766 = vst.msk [vmem:[%s570_s30] sm:$0xff] %vm577_vm0, %v2765_v20 }
0x1423   : > { %3392 = shalt.err (!%p3389_p5)
}
0x1424   : > { %s3393_s20 = scalar_lea.hbm %s2779_s2, 128  ;;  %s3397_s27 = scalar_lea.hbm %s4184_s1, 256 }
0x1425   : > { %p3394_p9 = scmp.ne.s32.totalorder %s2779_s2, %s3393_s20  ;;  %p3398_p12 = scmp.lt.s32.totalorder %s2779_s2, %s4184_s1 }
0x1426   : > { %p3399_p1 = scmp.lt.s32.totalorder %s3397_s27, %s3393_s20 }
0x1427   : > { %p3395_p0 = pnand %p3394_p9, %p4185_p3 }
0x1428   : > { %p3400_p6 = por %p3399_p1, %p3398_p12 }
0x1429   : > { %p3396_p11 = pneg %p3395_p0 }
0x142b   : > { %p3401_p13 = pnand %p3400_p6, %p3396_p11 }
0x142d   : > { %3404 = shalt.err (!%p3401_p13)
}
0x142e   : > { %3198 = dma.vmem_to_hbm [thread:$0]  (%p4185_p3), %s2782_s18, 128, %s2779_s2, %s2768_s29  }
0x142f PF: > { %s4186_s15 = sld [smem:[#allocation13_spill]]  ;;  %p4189_p8 = scmp.ge.s32.totalorder %s3447_s24, 2 }
0x1430   : > { %s4187_s17 = sld [smem:[#allocation18_spill]] }
0x1435   : > { %s2793_s21 = sand.u32 1, %s4186_s15  }
0x1436   : > { %p4188_p7 = scmp.ne.s32.totalorder %s4187_s17, 0  ;;  %s2794_s23 = scalar_lea.sflag [#allocation6], %s2793_s21 }
0x1438   : > { %p3208_p10 = pnand %p4189_p8, %p4188_p7 }
0x143a   : > { %p3209_p2 = pneg %p3208_p10 }
0x143c   : > { %3430 = dma.done.wait (%p3209_p2), %s2794_s23, 128  }
0x143d   : > { %3432 = vsyncadd (%p3209_p2), %s2794_s23, 4294967168  ;;  %s4190_s24 = sld [smem:[#allocation15_spill]]  ;;  %s4193_s21 = smov %s3439_s22 }
0x143e   : > { %s4191_s26 = sld [smem:[#allocation14_spill]] }
0x143f   : > { %s4192_s23 = sld [smem:[#allocation16_spill]] }
0x1443   : > { %p32_p4 = scmp.ge.s32.totalorder %s4190_s24, 4  }
0x1444   : > { %s4194_s22 = smov %s4191_s26 }
0x1445   :  { %34 = sbr.rel (!%p32_p4) target bundleno = 14 (0xe), region = 165 }
0x144a   :  { %2799 = vsyncpa [#allocation5], 1 }
0x144b   :  { %2801 = vsyncpa [#allocation5 + $0x1], 1 }
0x144c   :  { %2802 = vsyncpa [#allocation8], 1 }
0x144d   :  { %2804 = vsyncpa [#allocation8 + $0x1], 1 }
0x144e   :  { %2805 = vsyncpa [#allocation6], 1 }
0x144f   :  { %2807 = vsyncpa [#allocation6 + $0x1], 1 }

</bundles_post_ra>
